<compile_context>
chip_gen: v6e
topology: v6e:2x2x1
jax: 0.10.0
libtpu: 0.0.40
codegen_flags: <defaults>
</compile_context>

<pallas_src>
import functools

import numpy as np
import jax
import jax.numpy as jnp
from jax.experimental import pallas as pl
from jax.experimental.pallas import tpu as pltpu


LANE = 128            # TPU lane width
TILE_M_TARGET = 512   # output-row tile target
TILE_K_TARGET = 1024  # aggregation (A columns) tile target

# Robust against minor API renames across JAX versions.
_CompilerParams = getattr(pltpu, "CompilerParams", None) or getattr(
    pltpu, "TPUCompilerParams")


def _round_up(x, m):
    return (x + m - 1) // m * m


@functools.lru_cache(maxsize=1)
def _vmem_budget_bytes():
    """Per-generation VMEM budget: ~75% of physical, capped at 100 MiB.
    v5e/v6e (128 MiB physical) -> 96 MiB, v7x (64 MiB physical) -> 48 MiB."""
    cap = 128 * 1024 * 1024
    try:
        info = pltpu.get_tpu_info()
        for attr in ("vmem_capacity_bytes", "vmem_bytes", "vmem_size_bytes"):
            v = getattr(info, attr, None)
            if v:
                cap = int(v)
                break
    except Exception:
        pass
    return min(cap * 3 // 4, 100 * 1024 * 1024)


def _choose_row_tiling(n, target):
    """Row tile tm (multiple of 128, <= target) and padded node count (multiple of
    tm).  Prefers >= 2 row tiles so the 'parallel' row axis load-balances across
    two TensorCores (v7x); pads N up to a multiple of the tile instead of
    collapsing the tile to a small divisor."""
    target = max(LANE, target // LANE * LANE)
    n_pad = _round_up(max(n, LANE), LANE)
    if n_pad <= LANE:
        return n_pad, n_pad
    half = max(LANE, (n_pad // 2) // LANE * LANE)
    tm = max(LANE, min(target, half, n_pad))
    n_pad = _round_up(n_pad, tm)
    return n_pad, tm


def _choose_k_tile(n_pad, target, tm, d, budget):
    """Largest multiple-of-128 divisor of n_pad <= target whose per-layer VMEM
    footprint (double-buffered A/h/out tiles + resident weights + f32 accumulator)
    fits the per-generation budget."""
    target = max(LANE, target // LANE * LANE)
    fixed = (2 * tm * d * 2          # out tile (bf16, double-buffered)
             + tm * d * 4            # f32 accumulator scratch
             + 2 * (2 * d * d * 2)   # W1/W2 (bf16, double-buffered, constant idx)
             + 4 * (2 * d * 4))      # biases (f32)
    best = LANE
    t = LANE
    while t <= min(target, n_pad):
        if n_pad % t == 0:
            use = fixed + 2 * tm * t * 1 + 2 * t * d * 2   # A (int8) + h (bf16)
            if use <= budget:
                best = t
        t += LANE
    return best


def _block_occupancy(a_hat_np, tm, tk):
    """Per row tile: list of K-block indices containing any nonzero of A_hat.
    Returns (kb_flat [n_rows*max_k] int32, nb [n_rows] int32).  Padding slots
    repeat the last valid block (DMA dedup) and are compute-masked in the kernel."""
    n = a_hat_np.shape[0]
    nr, nk = n // tm, n // tk
    occ = (a_hat_np.reshape(nr, tm, nk, tk) != 0).any(axis=(1, 3))
    nb = occ.sum(axis=1).astype(np.int32)
    max_k = max(int(nb.max()), 1)
    kb = np.zeros((nr, max_k), np.int32)
    for r in range(nr):
        idx = np.nonzero(occ[r])[0].astype(np.int32)
        if idx.size == 0:
            idx = np.zeros((1,), np.int32)
        kb[r, :idx.size] = idx
        kb[r, idx.size:] = idx[-1]
    return jnp.asarray(kb.reshape(-1)), jnp.asarray(nb)


# ----------------------------------------------------------------------------
# Pallas kernels
# ----------------------------------------------------------------------------
def _linear_kernel(x_ref, w_ref, b_ref, o_ref):
    # o = x @ w + b   (bf16 matmul inputs, f32 accumulation, f32 bias add)
    z = jnp.dot(x_ref[...].astype(jnp.bfloat16), w_ref[...],
                preferred_element_type=jnp.float32) + b_ref[...]
    o_ref[...] = z.astype(o_ref.dtype)


def _gin_layer_kernel(kb_ref, nb_ref, a_ref, hk_ref, w1_ref, b1_ref, w2_ref,
                      b2_ref, o_ref, acc_ref):
    # One GIN layer, tiled over (row tiles, nonzero K blocks):
    #   acc += A_hat[i-tile, kb[i,j]-block] @ h[kb[i,j]-block]   (f32 accumulator)
    #   at last j: z = relu(acc @ W1 + b1) @ W2 + b2 ; out = relu(z)
    i = pl.program_id(0)
    j = pl.program_id(1)

    @pl.when(j == 0)
    def _():
        acc_ref[...] = jnp.zeros_like(acc_ref)

    @pl.when(j < nb_ref[i])          # mask padded (repeated) block-list entries
    def _():
        acc_ref[...] += jnp.dot(a_ref[...].astype(jnp.bfloat16), hk_ref[...],
                                preferred_element_type=jnp.float32)

    @pl.when(j == pl.num_programs(1) - 1)
    def _():
        z = jnp.dot(acc_ref[...].astype(jnp.bfloat16), w1_ref[...],
                    preferred_element_type=jnp.float32) + b1_ref[...]
        z = jnp.maximum(z, 0.0)
        z = jnp.dot(z.astype(jnp.bfloat16), w2_ref[...],
                    preferred_element_type=jnp.float32) + b2_ref[...]
        o_ref[...] = jnp.maximum(z, 0.0).astype(o_ref.dtype)


# ----------------------------------------------------------------------------
# Pallas wrappers
# ----------------------------------------------------------------------------
def pallas_linear(x, w, b, out_dtype, *, tm):
    n, din = x.shape
    dout = w.shape[1]
    vmem_limit = _vmem_budget_bytes()
    bytes_accessed = int(x.size * x.dtype.itemsize + w.size * w.dtype.itemsize
                         + b.size * b.dtype.itemsize
                         + n * dout * jnp.dtype(out_dtype).itemsize)
    return pl.pallas_call(
        _linear_kernel,
        out_shape=jax.ShapeDtypeStruct((n, dout), out_dtype),
        grid_spec=pltpu.PrefetchScalarGridSpec(
            num_scalar_prefetch=0,
            grid=(n // tm,),
            in_specs=[
                pl.BlockSpec((tm, din), lambda i: (i, 0)),     # x rows
                pl.BlockSpec((din, dout), lambda i: (0, 0)),   # W (VMEM-resident)
                pl.BlockSpec((1, dout), lambda i: (0, 0)),     # b
            ],
            out_specs=pl.BlockSpec((tm, dout), lambda i: (i, 0)),
        ),
        compiler_params=_CompilerParams(
            dimension_semantics=("parallel",),
            vmem_limit_bytes=vmem_limit,
        ),
        cost_estimate=pl.CostEstimate(
            flops=int(2 * n * din * dout), transcendentals=0,
            bytes_accessed=bytes_accessed),
    )(x, w, b)


def pallas_gin_layer(kb, nb, a_hat, h, w1, b1, w2, b2, *, tm, tk):
    n, d = h.shape
    n_rows = n // tm
    max_k = kb.shape[0] // n_rows
    vmem_limit = _vmem_budget_bytes()

    flops = int(2 * kb.size * tm * tk * d + 4 * n * d * d)
    bytes_accessed = int(kb.size * (tm * tk + tk * d * 2)
                         + 2 * n * d * 2
                         + 2 * d * d * 2 + 2 * d * 4)

    def a_map(i, j, kb_r, nb_r):
        return (i, kb_r[i * max_k + j])

    def h_map(i, j, kb_r, nb_r):
        return (kb_r[i * max_k + j], 0)

    return pl.pallas_call(
        _gin_layer_kernel,
        out_shape=jax.ShapeDtypeStruct((n, d), jnp.bfloat16),
        grid_spec=pltpu.PrefetchScalarGridSpec(
            num_scalar_prefetch=2,                    # kb, nb -> SMEM
            grid=(n_rows, max_k),
            in_specs=[
                pl.BlockSpec((tm, tk), a_map),                  # A_hat tile (int8)
                pl.BlockSpec((tk, d), h_map),                   # h rows for this block
                pl.BlockSpec((d, d), lambda i, j, kb_r, nb_r: (0, 0)),  # W1
                pl.BlockSpec((1, d), lambda i, j, kb_r, nb_r: (0, 0)),  # b1
                pl.BlockSpec((d, d), lambda i, j, kb_r, nb_r: (0, 0)),  # W2
                pl.BlockSpec((1, d), lambda i, j, kb_r, nb_r: (0, 0)),  # b2
            ],
            out_specs=pl.BlockSpec((tm, d), lambda i, j, kb_r, nb_r: (i, 0)),
            scratch_shapes=[pltpu.VMEM((tm, d), jnp.float32)],
        ),
        compiler_params=_CompilerParams(
            dimension_semantics=("parallel", "arbitrary"),
            vmem_limit_bytes=vmem_limit,
        ),
        cost_estimate=pl.CostEstimate(
            flops=flops, transcendentals=0, bytes_accessed=bytes_accessed),
    )(kb, nb, a_hat, h, w1, b1, w2, b2)


# ----------------------------------------------------------------------------
# Model: parameter init, graph prep, forward
# ----------------------------------------------------------------------------
def init_gin_params(key, in_dim, hidden_dim, out_dim, num_layers):
    """PyTorch nn.Linear default init (U(-k, k), k=1/sqrt(fan_in)), zero-padded to
    128-lane multiples.  Weights bf16 (half the HBM traffic, full-speed MXU),
    biases f32."""
    in_p = _round_up(in_dim, LANE)
    hid_p = _round_up(hidden_dim, LANE)
    out_p = _round_up(out_dim, LANE)

    def linear_init(key, fan_in, fan_out, fan_in_p, fan_out_p):
        kw, kb_ = jax.random.split(key)
        bound = float(fan_in) ** -0.5
        w = jax.random.uniform(kw, (fan_in, fan_out), jnp.float32, -bound, bound)
        b = jax.random.uniform(kb_, (fan_out,), jnp.float32, -bound, bound)
        w_p = jnp.zeros((fan_in_p, fan_out_p), jnp.float32).at[:fan_in, :fan_out].set(w)
        b_p = jnp.zeros((1, fan_out_p), jnp.float32).at[0, :fan_out].set(b)
        return w_p.astype(jnp.bfloat16), b_p

    keys = jax.random.split(key, 2 + 2 * num_layers)
    params = {}
    params["embed"] = linear_init(keys[0], in_dim, hidden_dim, in_p, hid_p)
    params["layers"] = []
    for i in range(num_layers):
        w1, b1 = linear_init(keys[1 + 2 * i], hidden_dim, hidden_dim, hid_p, hid_p)
        w2, b2 = linear_init(keys[2 + 2 * i], hidden_dim, hidden_dim, hid_p, hid_p)
        params["layers"].append((w1, b1, w2, b2))
    params["readout"] = linear_init(keys[1 + 2 * num_layers], hidden_dim, out_dim,
                                    hid_p, out_p)
    return params


def prepare_graph(adj, feats, in_p, hid_p, *,
                  tile_m_target=TILE_M_TARGET, tile_k_target=TILE_K_TARGET):
    """Pad graph/features to TPU-friendly shapes, fold the eps=0 self term into the
    adjacency (A_hat = A + I, int8, 0/1/2 exact), and build the nonzero-K-block
    lists for the sparse block skip.  Zero padding is exact: padded columns of
    A_hat are zero, so padded rows never feed real rows."""
    n = adj.shape[0]
    n_pad, tm = _choose_row_tiling(n, tile_m_target)
    tk = _choose_k_tile(n_pad, tile_k_target, tm, hid_p, _vmem_budget_bytes())

    adj_np = np.asarray(adj)
    a_hat = np.zeros((n_pad, n_pad), np.int8)
    a_hat[:n, :n] = (adj_np != 0).astype(np.int8)
    a_hat[np.arange(n), np.arange(n)] += 1          # + I  (GINConv eps=0 self term)

    kb, nb = _block_occupancy(a_hat, tm, tk)

    feats_np = np.asarray(feats, np.float32)
    h_pad = np.zeros((n_pad, in_p), np.float32)
    h_pad[:n, :feats_np.shape[1]] = feats_np

    return jnp.asarray(a_hat), kb, nb, jnp.asarray(h_pad), tm, tk


@functools.partial(jax.jit, static_argnames=("tm", "tk"))
def gin_forward_padded(params, a_hat, kb, nb, h_pad, *, tm, tk):
    # h = self.embedding(h)   (features cast to bf16 before the kernel)
    w_e, b_e = params["embed"]
    h = pallas_linear(h_pad.astype(jnp.bfloat16), w_e, b_e, jnp.bfloat16, tm=tm)
    # for conv in self.layers: h = relu(conv(g, h)); dropout (identity at eval)
    for (w1, b1, w2, b2) in params["layers"]:
        h = pallas_gin_layer(kb, nb, a_hat, h, w1, b1, w2, b2, tm=tm, tk=tk)
    # h = self.readout(h)
    w_r, b_r = params["readout"]
    return pallas_linear(h, w_r, b_r, jnp.float32, tm=tm)


# ----------------------------------------------------------------------------
# Pure-JAX references
# ----------------------------------------------------------------------------
def reference_forward_matched(params, a_hat, h_pad):
    """Same bf16 cast points as the kernels (f32 accumulation) -> tight check."""
    bf = jnp.bfloat16
    dot = lambda a, b: jnp.dot(a.astype(bf), b.astype(bf),
                               preferred_element_type=jnp.float32)
    w_e, b_e = params["embed"]
    h = (dot(h_pad, w_e) + b_e).astype(bf)
    for (w1, b1, w2, b2) in params["layers"]:
        m = dot(a_hat, h)                      # (A + I) @ h
        z = jnp.maximum(dot(m, w1) + b1, 0.0)
        z = dot(z, w2) + b2
        h = jnp.maximum(z, 0.0).astype(bf)
    w_r, b_r = params["readout"]
    return dot(h, w_r) + b_r


def reference_forward_f32(params, adj_pad_f32, h_pad):
    """Full-f32 reference with the original (unfused) GIN formulation h + A@h."""
    f32 = lambda x: x.astype(jnp.float32)
    w_e, b_e = params["embed"]
    h = h_pad @ f32(w_e) + b_e
    for (w1, b1, w2, b2) in params["layers"]:
        m = h + adj_pad_f32 @ h
        z = jnp.maximum(m @ f32(w1) + b1, 0.0) @ f32(w2) + b2
        h = jnp.maximum(z, 0.0)
    w_r, b_r = params["readout"]
    return h @ f32(w_r) + b_r


# ----------------------------------------------------------------------------
if __name__ == "__main__":
    key = jax.random.PRNGKey(0)
    k_feat, k_param = jax.random.split(key)

    # Small synthetic graph: path graph + two long-range edges (block-sparse A).
    N, in_dim, hidden_dim, out_dim, num_layers = 300, 20, 64, 7, 2
    adj = np.zeros((N, N), np.float32)
    i = np.arange(N - 1)
    adj[i, i + 1] = 1.0
    adj[i + 1, i] = 1.0
    adj[5, 250] = adj[250, 5] = 1.0

    feats = jax.random.normal(k_feat, (N, in_dim), jnp.float32)
    params = init_gin_params(k_param, in_dim, hidden_dim, out_dim, num_layers)
    in_p = params["embed"][0].shape[0]
    hid_p = params["layers"][0][0].shape[0]

    # Config 1: force small 128x128 tiles so the demo exercises multiple row tiles,
    # the sparse K-block lists, and the masked (j >= nnz) path.
    a_hat, kb, nb, h_pad, tm, tk = prepare_graph(
        adj, feats, in_p, hid_p, tile_m_target=128, tile_k_target=128)
    out_p = jax.block_until_ready(
        gin_forward_padded(params, a_hat, kb, nb, h_pad, tm=tm, tk=tk))
    out = out_p[:N, :out_dim]

    # Config 2: production defaults (big, VMEM-budgeted tiles; single K block here,
    # i.e. h effectively VMEM-resident).
    a_hat2, kb2, nb2, h_pad2, tm2, tk2 = prepare_graph(adj, feats, in_p, hid_p)
    out2 = jax.block_until_ready(
        gin_forward_padded(params, a_hat2, kb2, nb2, h_pad2, tm=tm2, tk=tk2))
    out2 = out2[:N, :out_dim]

    # References.
    n_pad = h_pad.shape[0]
    adj_pad_f32 = jnp.zeros((n_pad, n_pad), jnp.float32).at[:N, :N].set(
        jnp.asarray(adj))
    ref_matched = reference_forward_matched(params, a_hat, h_pad)[:N, :out_dim]
    ref_f32 = reference_forward_f32(params, adj_pad_f32, h_pad)[:N, :out_dim]

    assert out.shape == (N, out_dim)
    assert jnp.allclose(out, ref_matched, atol=5e-3, rtol=5e-3), (
        "config1 mismatch vs precision-matched reference: "
        f"{float(jnp.max(jnp.abs(out - ref_matched)))}")
    assert jnp.allclose(out2, ref_matched, atol=5e-3, rtol=5e-3), (
        "config2 mismatch vs precision-matched reference: "
        f"{float(jnp.max(jnp.abs(out2 - ref_matched)))}")
    assert jnp.allclose(out, ref_f32, atol=1e-1, rtol=1e-1), (
        "mismatch vs f32 reference: "
        f"{float(jnp.max(jnp.abs(out - ref_f32)))}")

    print("KERNEL_OK")
</pallas_src>

<mosaic_0001>
module attributes {stable_mosaic.version = 11 : i64} {
  func.func @_linear_kernel(%arg0: i32, %arg1: memref<128x128xbf16, #tpu.memory_space<vmem>>, %arg2: memref<128x128xbf16, #tpu.memory_space<vmem>>, %arg3: memref<1x128xf32, #tpu.memory_space<vmem>>, %arg4: memref<128x128xbf16, #tpu.memory_space<vmem>>) attributes {dimension_semantics = [#tpu.dimension_semantics<parallel>], iteration_bounds = array<i64: 3>, scalar_prefetch = 0 : i64, scratch_operands = 0 : i64, tpu.core_type = #tpu.core_type<tc>, window_params = [{transform_indices = @transform_0, window_bounds = array<i64: 128, 128>}, {pipeline_mode = #tpu.pipeline_mode<synchronous>, transform_indices = @transform_1, window_bounds = array<i64: 128, 128>}, {pipeline_mode = #tpu.pipeline_mode<synchronous>, transform_indices = @transform_2, window_bounds = array<i64: 1, 128>}, {transform_indices = @transform_3, window_bounds = array<i64: 128, 128>}]} {
    %c0 = arith.constant 0 : index
    %c0_0 = arith.constant 0 : index
    %0 = vector.load %arg1[%c0, %c0_0] : memref<128x128xbf16, #tpu.memory_space<vmem>>, vector<128x128xbf16>
    %c0_1 = arith.constant 0 : index
    %c0_2 = arith.constant 0 : index
    %1 = vector.load %arg2[%c0_1, %c0_2] : memref<128x128xbf16, #tpu.memory_space<vmem>>, vector<128x128xbf16>
    %cst = arith.constant dense<0.000000e+00> : vector<128x128xf32>
    %2 = tpu.matmul %0, %1, %cst {dimension_numbers = #tpu.dot_dimension_numbers<[1], [0], [0], [1], [0, 0, 1, 1], [], []>} : vector<128x128xbf16>, vector<128x128xbf16>, vector<128x128xf32> -> vector<128x128xf32>
    %c0_3 = arith.constant 0 : index
    %c0_4 = arith.constant 0 : index
    %3 = vector.load %arg3[%c0_3, %c0_4] : memref<1x128xf32, #tpu.memory_space<vmem>>, vector<1x128xf32>
    %4 = vector.broadcast %3 : vector<1x128xf32> to vector<128x128xf32>
    %5 = arith.addf %2, %4 : vector<128x128xf32>
    %6 = arith.truncf %5 : vector<128x128xf32> to vector<128x128xbf16>
    %c0_5 = arith.constant 0 : index
    %c0_6 = arith.constant 0 : index
    %7 = vector.load %arg4[%c0_5, %c0_6] : memref<128x128xbf16, #tpu.memory_space<vmem>>, vector<128x128xbf16>
    tpu.vector_store %arg4[%c0_5, %c0_6], %6 {strides = array<i32>} : memref<128x128xbf16, #tpu.memory_space<vmem>>, vector<128x128xbf16>,
    return
  }
  func.func @transform_0(%arg0: i32) -> (i32, i32) {
    %c0_i32 = arith.constant 0 : i32
    %c0_i32_0 = arith.constant 0 : i32
    return %arg0, %c0_i32 : i32, i32
  }
  func.func @transform_1(%arg0: i32) -> (i32, i32) {
    %c0_i32 = arith.constant 0 : i32
    %c0_i32_0 = arith.constant 0 : i32
    %c0_i32_1 = arith.constant 0 : i32
    return %c0_i32, %c0_i32_0 : i32, i32
  }
  func.func @transform_2(%arg0: i32) -> (i32, i32) {
    %c0_i32 = arith.constant 0 : i32
    %c0_i32_0 = arith.constant 0 : i32
    %c0_i32_1 = arith.constant 0 : i32
    return %c0_i32, %c0_i32_0 : i32, i32
  }
  func.func @transform_3(%arg0: i32) -> (i32, i32) {
    %c0_i32 = arith.constant 0 : i32
    %c0_i32_0 = arith.constant 0 : i32
    return %arg0, %c0_i32 : i32, i32
  }
}

module attributes {stable_mosaic.version = 11 : i64} {
  func.func @_linear_kernel(%arg0: i32, %arg1: memref<128x128xbf16, #tpu.memory_space<vmem>>, %arg2: memref<128x128xbf16, #tpu.memory_space<vmem>>, %arg3: memref<1x128xf32, #tpu.memory_space<vmem>>, %arg4: memref<128x128xf32, #tpu.memory_space<vmem>>) attributes {dimension_semantics = [#tpu.dimension_semantics<parallel>], iteration_bounds = array<i64: 3>, scalar_prefetch = 0 : i64, scratch_operands = 0 : i64, tpu.core_type = #tpu.core_type<tc>, window_params = [{transform_indices = @transform_0, window_bounds = array<i64: 128, 128>}, {pipeline_mode = #tpu.pipeline_mode<synchronous>, transform_indices = @transform_1, window_bounds = array<i64: 128, 128>}, {pipeline_mode = #tpu.pipeline_mode<synchronous>, transform_indices = @transform_2, window_bounds = array<i64: 1, 128>}, {transform_indices = @transform_3, window_bounds = array<i64: 128, 128>}]} {
    %c0 = arith.constant 0 : index
    %c0_0 = arith.constant 0 : index
    %0 = vector.load %arg1[%c0, %c0_0] : memref<128x128xbf16, #tpu.memory_space<vmem>>, vector<128x128xbf16>
    %c0_1 = arith.constant 0 : index
    %c0_2 = arith.constant 0 : index
    %1 = vector.load %arg2[%c0_1, %c0_2] : memref<128x128xbf16, #tpu.memory_space<vmem>>, vector<128x128xbf16>
    %cst = arith.constant dense<0.000000e+00> : vector<128x128xf32>
    %2 = tpu.matmul %0, %1, %cst {dimension_numbers = #tpu.dot_dimension_numbers<[1], [0], [0], [1], [0, 0, 1, 1], [], []>} : vector<128x128xbf16>, vector<128x128xbf16>, vector<128x128xf32> -> vector<128x128xf32>
    %c0_3 = arith.constant 0 : index
    %c0_4 = arith.constant 0 : index
    %3 = vector.load %arg3[%c0_3, %c0_4] : memref<1x128xf32, #tpu.memory_space<vmem>>, vector<1x128xf32>
    %4 = vector.broadcast %3 : vector<1x128xf32> to vector<128x128xf32>
    %5 = arith.addf %2, %4 : vector<128x128xf32>
    %c0_5 = arith.constant 0 : index
    %c0_6 = arith.constant 0 : index
    %6 = vector.load %arg4[%c0_5, %c0_6] : memref<128x128xf32, #tpu.memory_space<vmem>>, vector<128x128xf32>
    tpu.vector_store %arg4[%c0_5, %c0_6], %5 {strides = array<i32>} : memref<128x128xf32, #tpu.memory_space<vmem>>, vector<128x128xf32>,
    return
  }
  func.func @transform_0(%arg0: i32) -> (i32, i32) {
    %c0_i32 = arith.constant 0 : i32
    %c0_i32_0 = arith.constant 0 : i32
    return %arg0, %c0_i32 : i32, i32
  }
  func.func @transform_1(%arg0: i32) -> (i32, i32) {
    %c0_i32 = arith.constant 0 : i32
    %c0_i32_0 = arith.constant 0 : i32
    %c0_i32_1 = arith.constant 0 : i32
    return %c0_i32, %c0_i32_0 : i32, i32
  }
  func.func @transform_2(%arg0: i32) -> (i32, i32) {
    %c0_i32 = arith.constant 0 : i32
    %c0_i32_0 = arith.constant 0 : i32
    %c0_i32_1 = arith.constant 0 : i32
    return %c0_i32, %c0_i32_0 : i32, i32
  }
  func.func @transform_3(%arg0: i32) -> (i32, i32) {
    %c0_i32 = arith.constant 0 : i32
    %c0_i32_0 = arith.constant 0 : i32
    return %arg0, %c0_i32 : i32, i32
  }
}

module attributes {stable_mosaic.version = 11 : i64} {
  func.func @_gin_layer_kernel(%arg0: i32, %arg1: i32, %arg2: memref<9xi32, #tpu.memory_space<smem>>, %arg3: memref<3xi32, #tpu.memory_space<smem>>, %arg4: memref<128x128xi8, #tpu.memory_space<vmem>>, %arg5: memref<128x128xbf16, #tpu.memory_space<vmem>>, %arg6: memref<128x128xbf16, #tpu.memory_space<vmem>>, %arg7: memref<1x128xf32, #tpu.memory_space<vmem>>, %arg8: memref<128x128xbf16, #tpu.memory_space<vmem>>, %arg9: memref<1x128xf32, #tpu.memory_space<vmem>>, %arg10: memref<128x128xbf16, #tpu.memory_space<vmem>>, %arg11: memref<128x128xf32, #tpu.memory_space<vmem>>) attributes {dimension_semantics = [#tpu.dimension_semantics<parallel>, #tpu.dimension_semantics<arbitrary>], iteration_bounds = array<i64: 3, 3>, scalar_prefetch = 2 : i64, scratch_operands = 1 : i64, tpu.core_type = #tpu.core_type<tc>, window_params = [{transform_indices = @transform_0, window_bounds = array<i64: 128, 128>}, {transform_indices = @transform_1, window_bounds = array<i64: 128, 128>}, {pipeline_mode = #tpu.pipeline_mode<synchronous>, transform_indices = @transform_2, window_bounds = array<i64: 128, 128>}, {pipeline_mode = #tpu.pipeline_mode<synchronous>, transform_indices = @transform_3, window_bounds = array<i64: 1, 128>}, {pipeline_mode = #tpu.pipeline_mode<synchronous>, transform_indices = @transform_4, window_bounds = array<i64: 128, 128>}, {pipeline_mode = #tpu.pipeline_mode<synchronous>, transform_indices = @transform_5, window_bounds = array<i64: 1, 128>}, {transform_indices = @transform_6, window_bounds = array<i64: 128, 128>}]} {
    %c0_i32 = arith.constant 0 : i32
    %0 = arith.cmpi eq, %arg1, %c0_i32 : i32
    %1 = arith.extui %0 : i1 to i32
    %c0_i32_0 = arith.constant 0 : i32
    %2 = arith.cmpi ne, %1, %c0_i32_0 : i32
    scf.if %2 {
      %cst = arith.constant 0.000000e+00 : f32
      %11 = vector.broadcast %cst : f32 to vector<128x128xf32>
      %c0 = arith.constant 0 : index
      %c0_3 = arith.constant 0 : index
      %12 = vector.load %arg11[%c0, %c0_3] : memref<128x128xf32, #tpu.memory_space<vmem>>, vector<128x128xf32>
      tpu.vector_store %arg11[%c0, %c0_3], %11 {strides = array<i32>} : memref<128x128xf32, #tpu.memory_space<vmem>>, vector<128x128xf32>,
    } else {
    }
    %3 = arith.index_cast %arg0 : i32 to index
    %4 = memref.load %arg3[%3] : memref<3xi32, #tpu.memory_space<smem>>
    %5 = arith.cmpi slt, %arg1, %4 : i32
    %6 = arith.extui %5 : i1 to i32
    %c0_i32_1 = arith.constant 0 : i32
    %7 = arith.cmpi ne, %6, %c0_i32_1 : i32
    scf.if %7 {
      %c0 = arith.constant 0 : index
      %c0_3 = arith.constant 0 : index
      %11 = vector.load %arg11[%c0, %c0_3] : memref<128x128xf32, #tpu.memory_space<vmem>>, vector<128x128xf32>
      %c0_4 = arith.constant 0 : index
      %c0_5 = arith.constant 0 : index
      %12 = vector.load %arg4[%c0_4, %c0_5] : memref<128x128xi8, #tpu.memory_space<vmem>>, vector<128x128xi8>
      %13 = arith.sitofp %12 : vector<128x128xi8> to vector<128x128xbf16>
      %c0_6 = arith.constant 0 : index
      %c0_7 = arith.constant 0 : index
      %14 = vector.load %arg5[%c0_6, %c0_7] : memref<128x128xbf16, #tpu.memory_space<vmem>>, vector<128x128xbf16>
      %cst = arith.constant dense<0.000000e+00> : vector<128x128xf32>
      %15 = tpu.matmul %13, %14, %cst {dimension_numbers = #tpu.dot_dimension_numbers<[1], [0], [0], [1], [0, 0, 1, 1], [], []>} : vector<128x128xbf16>, vector<128x128xbf16>, vector<128x128xf32> -> vector<128x128xf32>
      %16 = arith.addf %11, %15 : vector<128x128xf32>
      %c0_8 = arith.constant 0 : index
      %c0_9 = arith.constant 0 : index
      %17 = vector.load %arg11[%c0_8, %c0_9] : memref<128x128xf32, #tpu.memory_space<vmem>>, vector<128x128xf32>
      tpu.vector_store %arg11[%c0_8, %c0_9], %16 {strides = array<i32>} : memref<128x128xf32, #tpu.memory_space<vmem>>, vector<128x128xf32>,
    } else {
    }
    %c2_i32 = arith.constant 2 : i32
    %8 = arith.cmpi eq, %arg1, %c2_i32 : i32
    %9 = arith.extui %8 : i1 to i32
    %c0_i32_2 = arith.constant 0 : i32
    %10 = arith.cmpi ne, %9, %c0_i32_2 : i32
    scf.if %10 {
      %c0 = arith.constant 0 : index
      %c0_3 = arith.constant 0 : index
      %11 = vector.load %arg11[%c0, %c0_3] : memref<128x128xf32, #tpu.memory_space<vmem>>, vector<128x128xf32>
      %12 = arith.truncf %11 : vector<128x128xf32> to vector<128x128xbf16>
      %c0_4 = arith.constant 0 : index
      %c0_5 = arith.constant 0 : index
      %13 = vector.load %arg6[%c0_4, %c0_5] : memref<128x128xbf16, #tpu.memory_space<vmem>>, vector<128x128xbf16>
      %cst = arith.constant dense<0.000000e+00> : vector<128x128xf32>
      %14 = tpu.matmul %12, %13, %cst {dimension_numbers = #tpu.dot_dimension_numbers<[1], [0], [0], [1], [0, 0, 1, 1], [], []>} : vector<128x128xbf16>, vector<128x128xbf16>, vector<128x128xf32> -> vector<128x128xf32>
      %c0_6 = arith.constant 0 : index
      %c0_7 = arith.constant 0 : index
      %15 = vector.load %arg7[%c0_6, %c0_7] : memref<1x128xf32, #tpu.memory_space<vmem>>, vector<1x128xf32>
      %16 = vector.broadcast %15 : vector<1x128xf32> to vector<128x128xf32>
      %17 = arith.addf %14, %16 : vector<128x128xf32>
      %cst_8 = arith.constant 0.000000e+00 : f32
      %18 = vector.broadcast %cst_8 : f32 to vector<128x128xf32>
      %19 = arith.maximumf %17, %18 : vector<128x128xf32>
      %20 = arith.truncf %19 : vector<128x128xf32> to vector<128x128xbf16>
      %c0_9 = arith.constant 0 : index
      %c0_10 = arith.constant 0 : index
      %21 = vector.load %arg8[%c0_9, %c0_10] : memref<128x128xbf16, #tpu.memory_space<vmem>>, vector<128x128xbf16>
      %cst_11 = arith.constant dense<0.000000e+00> : vector<128x128xf32>
      %22 = tpu.matmul %20, %21, %cst_11 {dimension_numbers = #tpu.dot_dimension_numbers<[1], [0], [0], [1], [0, 0, 1, 1], [], []>} : vector<128x128xbf16>, vector<128x128xbf16>, vector<128x128xf32> -> vector<128x128xf32>
      %c0_12 = arith.constant 0 : index
      %c0_13 = arith.constant 0 : index
      %23 = vector.load %arg9[%c0_12, %c0_13] : memref<1x128xf32, #tpu.memory_space<vmem>>, vector<1x128xf32>
      %24 = vector.broadcast %23 : vector<1x128xf32> to vector<128x128xf32>
      %25 = arith.addf %22, %24 : vector<128x128xf32>
      %cst_14 = arith.constant 0.000000e+00 : f32
      %26 = vector.broadcast %cst_14 : f32 to vector<128x128xf32>
      %27 = arith.maximumf %25, %26 : vector<128x128xf32>
      %28 = arith.truncf %27 : vector<128x128xf32> to vector<128x128xbf16>
      %c0_15 = arith.constant 0 : index
      %c0_16 = arith.constant 0 : index
      %29 = vector.load %arg10[%c0_15, %c0_16] : memref<128x128xbf16, #tpu.memory_space<vmem>>, vector<128x128xbf16>
      tpu.vector_store %arg10[%c0_15, %c0_16], %28 {strides = array<i32>} : memref<128x128xbf16, #tpu.memory_space<vmem>>, vector<128x128xbf16>,
    } else {
    }
    return
  }
  func.func @transform_0(%arg0: i32, %arg1: i32, %arg2: memref<9xi32, #tpu.memory_space<smem>>, %arg3: memref<3xi32, #tpu.memory_space<smem>>) -> (i32, i32) {
    %c3_i32 = arith.constant 3 : i32
    %0 = arith.muli %arg0, %c3_i32 : i32
    %1 = arith.addi %0, %arg1 : i32
    %2 = arith.index_cast %1 : i32 to index
    %3 = memref.load %arg2[%2] : memref<9xi32, #tpu.memory_space<smem>>
    %c0_i32 = arith.constant 0 : i32
    return %arg0, %3 : i32, i32
  }
  func.func @transform_1(%arg0: i32, %arg1: i32, %arg2: memref<9xi32, #tpu.memory_space<smem>>, %arg3: memref<3xi32, #tpu.memory_space<smem>>) -> (i32, i32) {
    %c3_i32 = arith.constant 3 : i32
    %0 = arith.muli %arg0, %c3_i32 : i32
    %1 = arith.addi %0, %arg1 : i32
    %2 = arith.index_cast %1 : i32 to index
    %3 = memref.load %arg2[%2] : memref<9xi32, #tpu.memory_space<smem>>
    %c0_i32 = arith.constant 0 : i32
    %c0_i32_0 = arith.constant 0 : i32
    return %3, %c0_i32 : i32, i32
  }
  func.func @transform_2(%arg0: i32, %arg1: i32, %arg2: memref<9xi32, #tpu.memory_space<smem>>, %arg3: memref<3xi32, #tpu.memory_space<smem>>) -> (i32, i32) {
    %c0_i32 = arith.constant 0 : i32
    %c0_i32_0 = arith.constant 0 : i32
    %c0_i32_1 = arith.constant 0 : i32
    return %c0_i32, %c0_i32_0 : i32, i32
  }
  func.func @transform_3(%arg0: i32, %arg1: i32, %arg2: memref<9xi32, #tpu.memory_space<smem>>, %arg3: memref<3xi32, #tpu.memory_space<smem>>) -> (i32, i32) {
    %c0_i32 = arith.constant 0 : i32
    %c0_i32_0 = arith.constant 0 : i32
    %c0_i32_1 = arith.constant 0 : i32
    return %c0_i32, %c0_i32_0 : i32, i32
  }
  func.func @transform_4(%arg0: i32, %arg1: i32, %arg2: memref<9xi32, #tpu.memory_space<smem>>, %arg3: memref<3xi32, #tpu.memory_space<smem>>) -> (i32, i32) {
    %c0_i32 = arith.constant 0 : i32
    %c0_i32_0 = arith.constant 0 : i32
    %c0_i32_1 = arith.constant 0 : i32
    return %c0_i32, %c0_i32_0 : i32, i32
  }
  func.func @transform_5(%arg0: i32, %arg1: i32, %arg2: memref<9xi32, #tpu.memory_space<smem>>, %arg3: memref<3xi32, #tpu.memory_space<smem>>) -> (i32, i32) {
    %c0_i32 = arith.constant 0 : i32
    %c0_i32_0 = arith.constant 0 : i32
    %c0_i32_1 = arith.constant 0 : i32
    return %c0_i32, %c0_i32_0 : i32, i32
  }
  func.func @transform_6(%arg0: i32, %arg1: i32, %arg2: memref<9xi32, #tpu.memory_space<smem>>, %arg3: memref<3xi32, #tpu.memory_space<smem>>) -> (i32, i32) {
    %c0_i32 = arith.constant 0 : i32
    %c0_i32_0 = arith.constant 0 : i32
    return %arg0, %c0_i32 : i32, i32
  }
}

</mosaic_0001>

<bundles_post_ra>
// kernel: gin_forward_padded.7
= control target key start
LH: loop header
LB: loop body
LE: loop exit
PB: predicated region body
PF: predicated region fallthrough
CT: control target
= control target key end

     0   :  { %8 = vsyncpa [#allocation3], 0  ;;  %s894_s0 = inlined_call_operand.vmem [shape: bf16[384,128], index: 0, kind: input, shape index: {}]   ;;  %s895_s1 = inlined_call_operand.vmem [shape: bf16[128,128], index: 1, kind: input, shape index: {}]   ;;  %s896_s2 = inlined_call_operand.vmem [shape: f32[1,128], index: 2, kind: input, shape index: {}]   ;;  %s897_s3 = inlined_call_operand.hbm [shape: f32[384,128], index: 3, kind: output, shape index: {}]  }
   0x1   :  { %10 = vsyncpa [#allocation3 + $0x1], 0  ;;  %s733_s12 = smov 0   ;;  %s735_s13 = smov 0  }
   0x2   :  { %s737_s14 = smov 0   ;;  %s739_s15 = smov 0  }
   0x3 LB: > { %s754_s16 = sadd.s32 4294967295, %s708_s15   ;;  %s497_s17 = sadd.s32 4294967294, %s708_s15   ;;  %s708_s15 = sphi %s739_s15, %s903_s15   ;;  %s704_s14 = sphi %s737_s14, %s902_s14   ;;  %s700_s13 = sphi %s735_s13, %s901_s13   ;;  %s696_s12 = sphi %s733_s12, %s900_s12  }
   0x4   : > { %s758_s18 = sadd.s32 1, %s708_s15   ;;  %s91_s19 = sadd.s32 1, %s704_s14 }
   0x5   : > { %s88_s20 = ssub.s32 %s708_s15, %s758_s18  ;;  %p101_p0 = scmp.ne.s32.totalorder %s704_s14, %s700_s13 }
   0x6   : > { %p89_p1 = scmp.eq.s32.totalorder %s88_s20, 0  ;;  %p102_p2 = scmp.eq.s32.totalorder %s754_s16, 2 }
   0x7   : > { %p107_p3 = scmp.ne.s32.totalorder %s700_s13, %s696_s12  ;;  %p108_p4 = scmp.eq.s32.totalorder %s497_s17, 2 }
   0x8   : > { %s769_s21 = scalar_select %p89_p1, %s704_s14, %s91_s19  }
   0x9   : > { %p771_p5 = por %p102_p2, %p101_p0  ;;  %p775_p6 = por %p108_p4, %p107_p3 }
   0xa   : > { %p500_p7 = scmp.ge.s32.totalorder %s708_s15, 1  ;;  %p141_p8 = scmp.lt.s32.totalorder %s708_s15, 4 }
   0xc   : > { %p142_p9 = pnand %p500_p7, %p141_p8 }
   0xd   : > { %s502_s26 = sshll.u32 (!%p142_p9), %s754_s16, 4  ;;  %s162_s27 = sand.u32 (!%p142_p9), 1, %s700_s13  }
   0xe   : > { %145 = sbr.rel (%p142_p9) target bundleno = 275 (0x113), region = 32  ;;  %p166_p10 = scmp.lt.s32.totalorder (!%p142_p9), %s502_s26, 47 }
   0xf   : > { %s501_s28 = sshll.u32 (!%p142_p9), %s162_s27, 7  ;;  %s526_s5 = sshll.u32 (!%p142_p9), %s754_s16, 11 }
  0x10   : > { %s844_s9 = scalar_lea.hbm (!%p142_p9), %s897_s3, %s526_s5  ;;  %s854_s16 = scalar_lea.sflag (!%p142_p9), [#allocation3], %s162_s27 }
  0x11   : > { %s710_s11 = smov (!%p142_p9), [#allocation2]  }
  0x12   : > { %s652_s17 = sshll.u32 (!%p142_p9), %s710_s11, 4  ;;  %s653_s17 = int_to_ptr.vmem [resolvable:$false] %s652_s17 }
  0x13   : > { %v632_v0 = vld [vmem:[%s895_s1 + $0x38] sm:$0xff]   ;;  %v633_v1 = vld [vmem:[%s895_s1 + $0x30] sm:$0xff]   ;;  %s905_s26 = smov (!%p166_p10, %s502_s26), 47  ;;  %v634_v2 = vld [vmem:[%s895_s1 + $0x28] sm:$0xff]   ;;  %s654_s19 = scalar_lea.vmem %s653_s17, 4096 }
  0x14   : > { %543 = vmatprep.subr.bf16.mxu0 %v632_v0  ;;  %575 = vmatprep.subr.bf16.mxu1 %v632_v0  ;;  %s503_s4 = sshll.u32 %s905_s26, 2  ;;  %v635_v3 = vld [vmem:[%s895_s1 + $0x20] sm:$0xff]   ;;  %v636_v6 = vld [vmem:[%s895_s1 + $0x18] sm:$0xff]   ;;  %v637_v7 = vld [vmem:[%s895_s1 + $0x10] sm:$0xff]  }
  0x15   : > { %544 = vmatpush3.bf16.msra.mxu0 %v632_v0  ;;  %583 = vmatpush3.bf16.msra.mxu1 %v632_v0  ;;  %s794_s7 = scalar_lea.vmem %s894_s0, %s503_s4  ;;  %v638_v8 = vld [vmem:[%s895_s1 + $0x8] sm:$0xff]   ;;  %v639_v9 = vld [vmem:[%s895_s1] sm:$0xff]   ;;  %s825_s4 = scalar_lea.vmem [#allocation2], %s501_s28 }
  0x16   : > { %545 = vmatprep.subr.bf16.mxu0 %v633_v1  ;;  %576 = vmatprep.subr.bf16.mxu1 %v633_v1  ;;  %v640_v4 = vld [vmem:[%s794_s7] sm:$0xff]   ;;  %v642_v10 = vld [vmem:[%s794_s7 + $0x8] sm:$0xff]   ;;  %v644_v12 = vld [vmem:[%s794_s7 + $0x10] sm:$0xff]   ;;  %s435_s6 = sshll.u32 %s825_s4, 4  ;;  %s846_s6 = int_to_ptr.vmem [resolvable:$true] %s435_s6 }
  0x17   : > { %v641_v5 = vld [vmem:[%s794_s7 + $0x20] sm:$0xff]   ;;  %559 = vmatprep.mubr.bf16.mxu0 %v640_v4  ;;  %v643_v11 = vld [vmem:[%s794_s7 + $0x28] sm:$0xff]   ;;  %v645_v13 = vld [vmem:[%s794_s7 + $0x30] sm:$0xff]   ;;  %s648_s10 = scalar_lea.vmem %s846_s6, 2048  ;;  %p655_p0 = scmp.lt.s32.totalorder %s846_s6, %s653_s17 }
  0x18   : > { %567 = vmatprep.mubr.bf16.mxu1 %v641_v5  ;;  %v646_v14 = vld [vmem:[%s794_s7 + $0x18] sm:$0xff]   ;;  %v504_v16 = vld [vmem:[%s896_s2] ss:$0 sm:$0xff]  ;;  %p649_p11 = scmp.ne.s32.totalorder %s846_s6, %s648_s10  ;;  %p656_p1 = scmp.lt.s32.totalorder %s654_s19, %s648_s10 }
  0x19   : > { %546 = vmatpush3.bf16.msra.mxu0 %v633_v1  ;;  %584 = vmatpush3.bf16.msra.mxu1 %v633_v1  ;;  %v647_v15 = vld [vmem:[%s794_s7 + $0x38] sm:$0xff]  }
  0x1a   : > { %547 = vmatprep.subr.bf16.mxu0 %v634_v2  ;;  %577 = vmatprep.subr.bf16.mxu1 %v634_v2  ;;  %p650_p12 = pnand %p649_p11, %p771_p5  ;;  %p657_p2 = por %p656_p1, %p655_p0 }
  0x1c   : > { %p651_p13 = pneg %p650_p12 }
  0x1d   : > { %548 = vmatpush3.bf16.msra.mxu0 %v634_v2  ;;  %585 = vmatpush3.bf16.msra.mxu1 %v634_v2 }
  0x1e   : > { %549 = vmatprep.subr.bf16.mxu0 %v635_v3  ;;  %578 = vmatprep.subr.bf16.mxu1 %v635_v3  ;;  %p658_p3 = pnand %p657_p2, %p651_p13 }
  0x21   : > { %550 = vmatpush3.bf16.msra.mxu0 %v635_v3  ;;  %586 = vmatpush3.bf16.msra.mxu1 %v635_v3 }
  0x22   : > { %551 = vmatprep.subr.bf16.mxu0 %v636_v6  ;;  %579 = vmatprep.subr.bf16.mxu1 %v636_v6 }
  0x25   : > { %552 = vmatpush3.bf16.msra.mxu0 %v636_v6  ;;  %587 = vmatpush3.bf16.msra.mxu1 %v636_v6 }
  0x26   : > { %553 = vmatprep.subr.bf16.mxu0 %v637_v7  ;;  %580 = vmatprep.subr.bf16.mxu1 %v637_v7 }
  0x29   : > { %554 = vmatpush3.bf16.msra.mxu0 %v637_v7  ;;  %588 = vmatpush3.bf16.msra.mxu1 %v637_v7 }
  0x2a   : > { %555 = vmatprep.subr.bf16.mxu0 %v638_v8  ;;  %581 = vmatprep.subr.bf16.mxu1 %v638_v8 }
  0x2d   : > { %556 = vmatpush3.bf16.msra.mxu0 %v638_v8  ;;  %589 = vmatpush3.bf16.msra.mxu1 %v638_v8 }
  0x2e   : > { %557 = vmatprep.subr.bf16.mxu0 %v639_v9  ;;  %582 = vmatprep.subr.bf16.mxu1 %v639_v9 }
  0x31   : > { %558 = vmatpush3.bf16.msra.mxu0 %v639_v9  ;;  %590 = vmatpush3.bf16.msra.mxu1 %v639_v9 }
  0x34   : > { %560 = vmatmul.mubr.bf16.vlgmr.msra.gmra.mxu0 %v642_v10  ;;  %568 = vmatmul.mubr.bf16.vlgmr.msra.gmra.mxu1 %v643_v11 }
  0x35   : > { %563 = vmatprep.mubr.bf16.mxu0 %v644_v12  ;;  %571 = vmatprep.mubr.bf16.mxu1 %v645_v13 }
  0x3c   : > { %564 = vmatmul.mubr.bf16.gmra.mxu0 %v646_v14  ;;  %572 = vmatmul.mubr.bf16.gmra.mxu1 %v647_v15 }
  0xf4   : > { %v561_v17 = vpop.f32.mrf.mxu0  ;;  %v569_v18 = vpop.f32.mrf.mxu1 }
  0xf5   : > { %v351_v19 = vadd.f32 %v561_v17, %v504_v16  ;;  %v383_v20 = vadd.f32 %v569_v18, %v504_v16 }
  0xf6   : > { %v342_v21 = vpop.f32.mrf.mxu0  ;;  %v374_v22 = vpop.f32.mrf.mxu1 }
  0xf7   : > { %407 = vst [vmem:[%s825_s4 + $0x10] sm:$0xff] %v351_v19  ;;  %415 = vst [vmem:[%s825_s4 + $0x50] sm:$0xff] %v383_v20  ;;  %v343_v23 = vadd.f32 %v504_v16, %v342_v21  ;;  %v375_v24 = vadd.f32 %v504_v16, %v374_v22 }
  0xf8   : > { %v562_v25 = vpop.f32.mrf.mxu0  ;;  %v570_v26 = vpop.f32.mrf.mxu1 }
  0xf9   : > { %405 = vst [vmem:[%s825_s4] sm:$0xff] %v343_v23  ;;  %413 = vst [vmem:[%s825_s4 + $0x40] sm:$0xff] %v375_v24  ;;  %v354_v27 = vadd.f32 %v562_v25, %v504_v16  ;;  %v386_v28 = vadd.f32 %v570_v26, %v504_v16 }
  0xfa   : > { %v345_v29 = vpop.f32.mrf.mxu0  ;;  %v377_v30 = vpop.f32.mrf.mxu1 }
  0xfb   : > { %408 = vst [vmem:[%s825_s4 + $0x18] sm:$0xff] %v354_v27  ;;  %416 = vst [vmem:[%s825_s4 + $0x58] sm:$0xff] %v386_v28  ;;  %v346_v31 = vadd.f32 %v504_v16, %v345_v29  ;;  %v378_v32 = vadd.f32 %v504_v16, %v377_v30 }
  0xfc   : > { %v565_v33 = vpop.f32.mrf.mxu0  ;;  %v573_v34 = vpop.f32.mrf.mxu1 }
  0xfd   : > { %406 = vst [vmem:[%s825_s4 + $0x8] sm:$0xff] %v346_v31  ;;  %414 = vst [vmem:[%s825_s4 + $0x48] sm:$0xff] %v378_v32  ;;  %v367_v35 = vadd.f32 %v565_v33, %v504_v16  ;;  %v399_v36 = vadd.f32 %v573_v34, %v504_v16 }
  0xfe   : > { %v358_v37 = vpop.f32.mrf.mxu0  ;;  %v390_v38 = vpop.f32.mrf.mxu1 }
  0xff   : > { %411 = vst [vmem:[%s825_s4 + $0x30] sm:$0xff] %v367_v35  ;;  %419 = vst [vmem:[%s825_s4 + $0x70] sm:$0xff] %v399_v36  ;;  %v359_v39 = vadd.f32 %v504_v16, %v358_v37  ;;  %v391_v40 = vadd.f32 %v504_v16, %v390_v38 }
 0x100   : > { %v566_v41 = vpop.f32.mrf.mxu0  ;;  %v574_v42 = vpop.f32.mrf.mxu1 }
 0x101   : > { %409 = vst [vmem:[%s825_s4 + $0x20] sm:$0xff] %v359_v39  ;;  %417 = vst [vmem:[%s825_s4 + $0x60] sm:$0xff] %v391_v40  ;;  %v370_v43 = vadd.f32 %v566_v41, %v504_v16  ;;  %v402_v44 = vadd.f32 %v574_v42, %v504_v16 }
 0x102   : > { %v361_v45 = vpop.f32.mrf.mxu0  ;;  %v393_v46 = vpop.f32.mrf.mxu1 }
 0x103   : > { %412 = vst [vmem:[%s825_s4 + $0x38] sm:$0xff] %v370_v43  ;;  %420 = vst [vmem:[%s825_s4 + $0x78] sm:$0xff] %v402_v44  ;;  %v362_v47 = vadd.f32 %v504_v16, %v361_v45  ;;  %v394_v48 = vadd.f32 %v504_v16, %v393_v46 }
 0x105   : > { %410 = vst [vmem:[%s825_s4 + $0x28] sm:$0xff] %v362_v47  ;;  %418 = vst [vmem:[%s825_s4 + $0x68] sm:$0xff] %v394_v48 }
 0x106   : > { %661 = shalt.err (!%p658_p3)
}
 0x107   : > { %s662_s20 = scalar_lea.hbm %s844_s9, 2048  ;;  %s666_s26 = scalar_lea.hbm %s897_s3, 6144 }
 0x108   : > { %p663_p4 = scmp.ne.s32.totalorder %s844_s9, %s662_s20  ;;  %p667_p9 = scmp.lt.s32.totalorder %s844_s9, %s897_s3 }
 0x109   : > { %p668_p10 = scmp.lt.s32.totalorder %s666_s26, %s662_s20 }
 0x10a   : > { %p664_p7 = pnand %p663_p4, %p771_p5 }
 0x10b   : > { %p669_p11 = por %p668_p10, %p667_p9 }
 0x10c   : > { %p665_p8 = pneg %p664_p7 }
 0x10e   : > { %p670_p12 = pnand %p669_p11, %p665_p8 }
 0x110   : > { %673 = shalt.err (!%p670_p12)
}
 0x111   : > { %s711_s29 = smov 128   ;;  %s712_s30 = smov 8  }
 0x112   : > { %591 = dma.vmem_to_hbm [thread:$0]  (%p771_p5), %s846_s6, 2048, %s844_s9, %s854_s16, %s711_s29, %s711_s29, %s712_s30  }
 0x113 PF: > { %p597_p13 = scmp.ge.s32.totalorder %s708_s15, 2  ;;  %s450_s4 = sand.u32 1, %s696_s12  }
 0x114   : > { %s451_s5 = scalar_lea.sflag [#allocation3], %s450_s4 }
 0x115   : > { %p594_p0 = pnand %p597_p13, %p775_p6 }
 0x117   : > { %p595_p1 = pneg %p594_p0 }
 0x119   : > { %691 = dma.done.wait (%p595_p1), %s451_s5, 2048  }
 0x11a   : > { %693 = vsyncadd (%p595_p1), %s451_s5, 4294965248  ;;  %p13_p2 = scmp.ge.s32.totalorder %s758_s18, 5   ;;  %s900_s12 = smov %s700_s13 }
 0x11b   : > { %s901_s13 = smov %s704_s14  ;;  %s902_s14 = smov %s769_s21 }
 0x11c   : > { %s903_s15 = smov %s758_s18  ;;  %15 = sbr.rel (!%p13_p2) target bundleno = 3 (0x3), region = 67 }
 0x121   :  { %456 = vsyncpa [#allocation3], 1 }
 0x122   :  { %458 = vsyncpa [#allocation3 + $0x1], 1 }

// kernel: gin_forward_padded.4
= control target key start
LH: loop header
LB: loop body
LE: loop exit
PB: predicated region body
PF: predicated region fallthrough
CT: control target
= control target key end

     0   :  { %s766_s12 = smov 0   ;;  %s837_s0 = inlined_call_operand.vmem [shape: bf16[384,128], index: 0, kind: input, shape index: {}]   ;;  %s838_s1 = inlined_call_operand.vmem [shape: bf16[128,128], index: 1, kind: input, shape index: {}]   ;;  %s839_s2 = inlined_call_operand.vmem [shape: f32[1,128], index: 2, kind: input, shape index: {}]   ;;  %s840_s3 = inlined_call_operand.vmem [shape: bf16[384,128], index: 3, kind: output, shape index: {}]  }
   0x1 LB: > { %s543_s13 = sadd.s32 4294967295, %s744_s12   ;;  %p547_p0 = scmp.ge.s32.totalorder %s744_s12, 1  ;;  %s744_s12 = sphi %s766_s12, %s13_s12  }
   0x2   : > { %p138_p1 = scmp.lt.s32.totalorder %s744_s12, 4 }
   0x4   : > { %p139_p2 = pnand %p547_p0, %p138_p1 }
   0x5   : > { %s548_s16 = sshll.u32 (!%p139_p2), %s543_s13, 4 }
   0x6   : > { %142 = sbr.rel (%p139_p2) target bundleno = 256 (0x100), region = 32  ;;  %p163_p3 = scmp.lt.s32.totalorder (!%p139_p2), %s548_s16, 47 }
   0xb   : > { %v722_v0 = vld [vmem:[%s838_s1 + $0x38] sm:$0xff]   ;;  %v723_v1 = vld [vmem:[%s838_s1 + $0x30] sm:$0xff]   ;;  %s842_s16 = smov (!%p163_p3, %s548_s16), 47  ;;  %v724_v2 = vld [vmem:[%s838_s1 + $0x28] sm:$0xff]  }
   0xc   : > { %666 = vmatprep.subr.bf16.mxu0 %v722_v0  ;;  %698 = vmatprep.subr.bf16.mxu1 %v722_v0  ;;  %s549_s21 = sshll.u32 %s842_s16, 2  ;;  %v725_v3 = vld [vmem:[%s838_s1 + $0x20] sm:$0xff]   ;;  %v726_v6 = vld [vmem:[%s838_s1 + $0x18] sm:$0xff]   ;;  %v727_v7 = vld [vmem:[%s838_s1 + $0x10] sm:$0xff]  }
   0xd   : > { %667 = vmatpush3.bf16.msra.mxu0 %v722_v0  ;;  %706 = vmatpush3.bf16.msra.mxu1 %v722_v0  ;;  %s791_s24 = scalar_lea.vmem %s837_s0, %s549_s21  ;;  %v728_v8 = vld [vmem:[%s838_s1 + $0x8] sm:$0xff]   ;;  %v729_v9 = vld [vmem:[%s838_s1] sm:$0xff]   ;;  %s824_s13 = scalar_lea.vmem %s840_s3, %s549_s21 }
   0xe   : > { %668 = vmatprep.subr.bf16.mxu0 %v723_v1  ;;  %699 = vmatprep.subr.bf16.mxu1 %v723_v1  ;;  %v730_v4 = vld [vmem:[%s791_s24] sm:$0xff]   ;;  %v732_v10 = vld [vmem:[%s791_s24 + $0x8] sm:$0xff]   ;;  %v734_v12 = vld [vmem:[%s791_s24 + $0x10] sm:$0xff]  }
   0xf   : > { %v731_v5 = vld [vmem:[%s791_s24 + $0x20] sm:$0xff]   ;;  %682 = vmatprep.mubr.bf16.mxu0 %v730_v4  ;;  %v733_v11 = vld [vmem:[%s791_s24 + $0x28] sm:$0xff]   ;;  %v735_v13 = vld [vmem:[%s791_s24 + $0x30] sm:$0xff]  }
  0x10   : > { %690 = vmatprep.mubr.bf16.mxu1 %v731_v5  ;;  %v736_v14 = vld [vmem:[%s791_s24 + $0x18] sm:$0xff]   ;;  %v552_v18 = vld [vmem:[%s839_s2] ss:$0 sm:$0xff] }
  0x11   : > { %669 = vmatpush3.bf16.msra.mxu0 %v723_v1  ;;  %707 = vmatpush3.bf16.msra.mxu1 %v723_v1  ;;  %v737_v15 = vld [vmem:[%s791_s24 + $0x38] sm:$0xff]  }
  0x12   : > { %670 = vmatprep.subr.bf16.mxu0 %v724_v2  ;;  %700 = vmatprep.subr.bf16.mxu1 %v724_v2 }
  0x15   : > { %671 = vmatpush3.bf16.msra.mxu0 %v724_v2  ;;  %708 = vmatpush3.bf16.msra.mxu1 %v724_v2 }
  0x16   : > { %672 = vmatprep.subr.bf16.mxu0 %v725_v3  ;;  %701 = vmatprep.subr.bf16.mxu1 %v725_v3 }
  0x19   : > { %673 = vmatpush3.bf16.msra.mxu0 %v725_v3  ;;  %709 = vmatpush3.bf16.msra.mxu1 %v725_v3 }
  0x1a   : > { %674 = vmatprep.subr.bf16.mxu0 %v726_v6  ;;  %702 = vmatprep.subr.bf16.mxu1 %v726_v6 }
  0x1d   : > { %675 = vmatpush3.bf16.msra.mxu0 %v726_v6  ;;  %710 = vmatpush3.bf16.msra.mxu1 %v726_v6 }
  0x1e   : > { %676 = vmatprep.subr.bf16.mxu0 %v727_v7  ;;  %703 = vmatprep.subr.bf16.mxu1 %v727_v7 }
  0x21   : > { %677 = vmatpush3.bf16.msra.mxu0 %v727_v7  ;;  %711 = vmatpush3.bf16.msra.mxu1 %v727_v7 }
  0x22   : > { %678 = vmatprep.subr.bf16.mxu0 %v728_v8  ;;  %704 = vmatprep.subr.bf16.mxu1 %v728_v8 }
  0x25   : > { %679 = vmatpush3.bf16.msra.mxu0 %v728_v8  ;;  %712 = vmatpush3.bf16.msra.mxu1 %v728_v8 }
  0x26   : > { %680 = vmatprep.subr.bf16.mxu0 %v729_v9  ;;  %705 = vmatprep.subr.bf16.mxu1 %v729_v9 }
  0x29   : > { %681 = vmatpush3.bf16.msra.mxu0 %v729_v9  ;;  %713 = vmatpush3.bf16.msra.mxu1 %v729_v9 }
  0x2c   : > { %683 = vmatmul.mubr.bf16.vlgmr.msra.gmra.mxu0 %v732_v10  ;;  %691 = vmatmul.mubr.bf16.vlgmr.msra.gmra.mxu1 %v733_v11 }
  0x2d   : > { %686 = vmatprep.mubr.bf16.mxu0 %v734_v12  ;;  %694 = vmatprep.mubr.bf16.mxu1 %v735_v13 }
  0x34   : > { %687 = vmatmul.mubr.bf16.gmra.mxu0 %v736_v14  ;;  %695 = vmatmul.mubr.bf16.gmra.mxu1 %v737_v15 }
  0xec   : > { %v684_v16 = vpop.f32.mrf.mxu0  ;;  %v692_v17 = vpop.f32.mrf.mxu1 }
  0xed   : > { %v353_v23 = vadd.f32 %v684_v16, %v552_v18  ;;  %v385_v24 = vadd.f32 %v692_v17, %v552_v18 }
  0xee   : > { %v344_v19 = vpop.f32.mrf.mxu0  ;;  %v376_v20 = vpop.f32.mrf.mxu1 }
  0xef   : > { %v345_v27 = vadd.f32 %v552_v18, %v344_v19  ;;  %v377_v28 = vadd.f32 %v552_v18, %v376_v20 }
  0xf0   : > { %v685_v21 = vpop.f32.mrf.mxu0  ;;  %v693_v22 = vpop.f32.mrf.mxu1 }
  0xf1   : > { %v356_v25 = vadd.f32 %v685_v21, %v552_v18  ;;  %v388_v26 = vadd.f32 %v693_v22, %v552_v18 }
  0xf2   : > { %v347_v29 = vpop.f32.mrf.mxu0  ;;  %v379_v30 = vpop.f32.mrf.mxu1 }
  0xf3   : > { %v611_v31 = vpack.c.bf16 %v356_v25, %v353_v23  ;;  %v631_v32 = vpack.c.bf16 %v388_v26, %v385_v24  ;;  %v348_v33 = vadd.f32 %v552_v18, %v347_v29  ;;  %v380_v34 = vadd.f32 %v552_v18, %v379_v30 }
  0xf4   : > { %v688_v35 = vpop.f32.mrf.mxu0  ;;  %v696_v36 = vpop.f32.mrf.mxu1 }
  0xf5   : > { %643 = vst [vmem:[%s824_s13 + $0x8] sm:$0xff] %v611_v31   ;;  %647 = vst [vmem:[%s824_s13 + $0x28] sm:$0xff] %v631_v32   ;;  %v606_v37 = vpack.c.bf16 %v348_v33, %v345_v27  ;;  %v626_v38 = vpack.c.bf16 %v380_v34, %v377_v28  ;;  %v369_v43 = vadd.f32 %v688_v35, %v552_v18 }
  0xf6   : > { %v360_v39 = vpop.f32.mrf.mxu0  ;;  %v392_v40 = vpop.f32.mrf.mxu1  ;;  %v401_v44 = vadd.f32 %v696_v36, %v552_v18 }
  0xf7   : > { %607 = vst [vmem:[%s824_s13] sm:$0xff] %v606_v37   ;;  %646 = vst [vmem:[%s824_s13 + $0x20] sm:$0xff] %v626_v38   ;;  %v361_v47 = vadd.f32 %v552_v18, %v360_v39  ;;  %v393_v48 = vadd.f32 %v552_v18, %v392_v40 }
  0xf8   : > { %v689_v41 = vpop.f32.mrf.mxu0  ;;  %v697_v42 = vpop.f32.mrf.mxu1 }
  0xf9   : > { %v372_v45 = vadd.f32 %v689_v41, %v552_v18  ;;  %v404_v46 = vadd.f32 %v697_v42, %v552_v18 }
  0xfa   : > { %v363_v49 = vpop.f32.mrf.mxu0  ;;  %v395_v50 = vpop.f32.mrf.mxu1 }
  0xfb   : > { %v621_v51 = vpack.c.bf16 %v372_v45, %v369_v43  ;;  %v641_v52 = vpack.c.bf16 %v404_v46, %v401_v44  ;;  %v364_v53 = vadd.f32 %v552_v18, %v363_v49  ;;  %v396_v54 = vadd.f32 %v552_v18, %v395_v50 }
  0xfd   : > { %645 = vst [vmem:[%s824_s13 + $0x18] sm:$0xff] %v621_v51   ;;  %649 = vst [vmem:[%s824_s13 + $0x38] sm:$0xff] %v641_v52   ;;  %v616_v55 = vpack.c.bf16 %v364_v53, %v361_v47  ;;  %v636_v56 = vpack.c.bf16 %v396_v54, %v393_v48 }
  0xff   : > { %644 = vst [vmem:[%s824_s13 + $0x10] sm:$0xff] %v616_v55   ;;  %648 = vst [vmem:[%s824_s13 + $0x30] sm:$0xff] %v636_v56  }
 0x100 PF: > { %s13_s12 = sadd.s32 1, %s744_s12  }
 0x101   : > { %p10_p4 = scmp.ge.s32.totalorder %s13_s12, 5  }
 0x103   :  { %12 = sbr.rel (!%p10_p4) target bundleno = 1 (0x1), region = 62 }

// kernel: gin_forward_padded.5
= control target key start
LH: loop header
LB: loop body
LE: loop exit
PB: predicated region body
PF: predicated region fallthrough
CT: control target
= control target key end

     0   :  { %s1892_s0 = inlined_call_operand.vmem [shape: s32[9], index: 0, kind: input, shape index: {}]   ;;  %s1893_s2 = inlined_call_operand.vmem [shape: s8[384,384], index: 2, kind: input, shape index: {}]   ;;  %s1894_s3 = inlined_call_operand.vmem [shape: bf16[384,128], index: 3, kind: input, shape index: {}]   ;;  %s1895_s4 = inlined_call_operand.vmem [shape: bf16[128,128], index: 4, kind: input, shape index: {}]   ;;  %s1896_s5 = inlined_call_operand.vmem [shape: f32[1,128], index: 5, kind: input, shape index: {}]   ;;  %s1897_s6 = inlined_call_operand.vmem [shape: bf16[128,128], index: 6, kind: input, shape index: {}]   ;;  %s1898_s7 = inlined_call_operand.vmem [shape: f32[1,128], index: 7, kind: input, shape index: {}]   ;;  %s1899_s8 = inlined_call_operand.vmem [shape: bf16[384,128], index: 8, kind: output, shape index: {}]   ;;  %s1900_s1 = inlined_call_operand.vmem [shape: s32[3], index: 1, kind: input, shape index: {}]  }
   0x1   :  { %s13_s29 = sshll.u32 %s1892_s0, 4  ;;  %s17_s10 = sshll.u32 %s1900_s1, 4  ;;  %s14_s29 = int_to_ptr.vmem [resolvable:$true] %s13_s29  ;;  %s18_s10 = int_to_ptr.vmem [resolvable:$true] %s17_s10 }
   0x2   :  { %s1572_s11 = scalar_lea.vmem %s14_s29, 16  ;;  %p1577_p1 = scmp.lt.s32.totalorder %s14_s29, %s14_s29 }
   0x3   :  { %p1573_p0 = scmp.ne.s32.totalorder %s14_s29, %s1572_s11  ;;  %p1578_p2 = scmp.lt.s32.totalorder %s1572_s11, %s1572_s11 }
   0x5   :  { %p1579_p3 = por %p1578_p2, %p1577_p1 }
   0x7   :  { %p1580_p4 = pnand %p1579_p3, %p1573_p0 }
   0x9   :  { %1583 = shalt.err (!%p1580_p4)  }
   0xa   :  { %s1654_s12 = smov [#allocation4]   ;;  %s1584_s13 = scalar_lea.vmem %s18_s10, 16 }
   0xb   :  { %16 = dma.vmem_to_smem %s14_s29, 16, %s1654_s12, [#allocation3] }
   0xc   :  { %p1585_p5 = scmp.ne.s32.totalorder %s18_s10, %s1584_s13  ;;  %p1589_p6 = scmp.lt.s32.totalorder %s18_s10, %s18_s10 }
   0xd   :  { %p1590_p7 = scmp.lt.s32.totalorder %s1584_s13, %s1584_s13 }
   0xf   :  { %p1591_p8 = por %p1590_p7, %p1589_p6 }
  0x11   :  { %p1592_p9 = pnand %p1591_p8, %p1585_p5 }
  0x13   :  { %1595 = shalt.err (!%p1592_p9)  }
  0x14   :  { %s1655_s0 = smov [#allocation5]  }
  0x15   :  { %20 = dma.vmem_to_smem %s18_s10, 16, %s1655_s0, [#allocation3] }
  0x16   :  { %1624 = dma.done.wait [#allocation3], 32 }
  0x17   :  { %1625 = vsyncadd [#allocation3], 4294967264 }
  0x18   :  { %22 = sfence }
  0x19   :  { %s1708_s1 = smov 0   ;;  %s1710_s14 = smov 0  }
  0x1a   :  { %s1712_s15 = smov 0   ;;  %s1714_s16 = smov 0  }
  0x1b   :  { %s1716_s17 = smov 0   ;;  %s1718_s18 = smov 0  }
  0x1c   :  { %s1720_s19 = smov 0  }
  0x1d LB: > { %s37_s20 = sadd.s32 1, %s1644_s17  ;;  %s40_s21 = sadd.s32 1, %s1648_s18  ;;  %s1652_s19 = sphi %s1720_s19, %s28_s19   ;;  %s1648_s18 = sphi %s1718_s18, %s1907_s18   ;;  %s1644_s17 = sphi %s1716_s17, %s1906_s17   ;;  %s1640_s16 = sphi %s1714_s16, %s1905_s16   ;;  %s1636_s15 = sphi %s1712_s15, %s1904_s15   ;;  %s1632_s14 = sphi %s1710_s14, %s1903_s14   ;;  %s1628_s1 = sphi %s1708_s1, %s1902_s1  }
  0x1e   : > { %p38_p10 = scmp.ge.s32.totalorder %s37_s20, 3  ;;  %s44_s22 = smul.u32 3, %s1648_s18 }
  0x1f   : > { %p62_p11 = scmp.ne.s32.totalorder %s1632_s14, %s1628_s1  ;;  %p63_p12 = scmp.eq.s32.totalorder %s1652_s19, 0 }
  0x20   : > { %s1909_s20 = smov (%p38_p10, %s37_s20), 0  ;;  %s1911_s21 = smov (!%p38_p10, %s40_s21), %s1648_s18 }
  0x21   : > { %p42_p13 = scmp.ge.s32.totalorder %s1911_s21, 3  ;;  %s45_s23 = sadd.s32 %s1644_s17, %s44_s22 }
  0x22   : > { %p1753_p0 = por %p63_p12, %p62_p11  ;;  %s46_s26 = sld [smem:[#allocation4 + %s45_s23]] }
  0x23   : > { %s1913_s21 = smov (%p42_p13, %s1911_s21), 0  ;;  %s55_s10 = sadd.s32 1, %s1632_s14 }
  0x24   : > { %s47_s25 = smul.u32 3, %s1913_s21  ;;  %s50_s29 = ssub.s32 %s1648_s18, %s1913_s21 }
  0x25   : > { %p1207_p2 = scmp.ge.s32.totalorder %s1652_s19, 9 }
  0x26   : > { %s48_s27 = sadd.s32 %s47_s25, %s1909_s20 }
  0x27   : > { %s49_s28 = sld [smem:[#allocation4 + %s48_s27]] }
  0x2d   : > { %s51_s30 = ssub.s32 %s46_s26, %s49_s28  ;;  %242 = sbr.rel (%p1207_p2) target bundleno = 62 (0x3e), region = 32 }
  0x2e   : > { %s52_s9 = sor.u32 %s51_s30, %s50_s29 }
  0x2f   : > { %p53_p1 = scmp.eq.s32.totalorder %s52_s9, 0 }
  0x31   : > { %s1765_s11 = scalar_select %p53_p1, %s1632_s14, %s55_s10  }
  0x32   : > { %245 = sbr.rel (!%p1753_p0) target bundleno = 62 (0x3e), region = 36  ;;  %s252_s12 = sld [smem:[#allocation4 + %s45_s23]] (%p1753_p0) }
  0x33   : > { %s247_s13 = sand.u32 (%p1753_p0), 1, %s1632_s14   ;;  %s1488_s0 = smul.u32 (%p1753_p0), 12, %s1648_s18 }
  0x34   : > { %s1208_s22 = sshll.u32 (%p1753_p0), %s247_s13, 5 }
  0x35   : > { %s249_s30 = scalar_lea.vmem (%p1753_p0), [#allocation6], %s1208_s22 }
  0x38   : > { %s255_s25 = sadd.s32 %s1488_s0, %s252_s12 }
  0x39   : > { %s1211_s27 = sshll.u32 %s255_s25, 3 }
  0x3a   : > { %s257_s29 = scalar_lea.vmem %s1893_s2, %s1211_s27 }
  0x3b   : > { %v292_v0 = vld [vmem:[%s257_s29] sm:$0xff]  ;;  %v294_v1 = vld [vmem:[%s257_s29 + $0x18] sm:$0xff]  ;;  %v296_v2 = vld [vmem:[%s257_s29 + $0x30] sm:$0xff] }
  0x3c   : > { %293 = vst [vmem:[%s249_s30] sm:$0xff] %v292_v0  ;;  %295 = vst [vmem:[%s249_s30 + $0x8] sm:$0xff] %v294_v1  ;;  %v298_v3 = vld [vmem:[%s257_s29 + $0x48] sm:$0xff] }
  0x3d   : > { %297 = vst [vmem:[%s249_s30 + $0x10] sm:$0xff] %v296_v2  ;;  %299 = vst [vmem:[%s249_s30 + $0x18] sm:$0xff] %v298_v3 }
  0x3e PF: > { %p1212_p3 = scmp.ge.s32.totalorder %s1652_s19, 1  ;;  %p319_p4 = scmp.lt.s32.totalorder %s1652_s19, 10 }
  0x40   : > { %p320_p5 = pnand %p1212_p3, %p319_p4 }
  0x41   : > { %s326_s23 = sand.u32 (!%p320_p5), 1, %s1628_s1   ;;  %s367_s24 = smul.u32 (!%p320_p5), 3, %s1640_s16 }
  0x42   : > { %323 = sbr.rel (%p320_p5) target bundleno = 821 (0x335), region = 78  ;;  %s1213_s9 = sshll.u32 (!%p320_p5), %s326_s23, 5 }
  0x43   : > { %s1216_s10 = sshll.u32 (!%p320_p5), %s1640_s16, 4  ;;  %s368_s12 = sadd.s32 (!%p320_p5), %s1636_s15, %s367_s24 }
  0x44   : > { %s369_s13 = sld [smem:[#allocation4 + %s368_s12]] (!%p320_p5)  ;;  %p380_p6 = scmp.lt.s32.totalorder (!%p320_p5), %s1216_s10, 47 }
  0x45   : > { %s1791_s23 = scalar_lea.vmem (!%p320_p5), [#allocation6], %s1213_s9  ;;  %p1218_p8 = scmp.ne.s32.totalorder (!%p320_p5), %s1636_s15, 0 }
  0x47   : > { %s1915_s10 = smov (!%p380_p6, %s1216_s10), 47 }
  0x48   : > { %s1217_s0 = sshll.u32 %s1915_s10, 2 }
  0x49   : > { %s1784_s27 = scalar_lea.vmem %s1899_s8, %s1217_s0 }
  0x4a   : > { %s1214_s26 = sshll.u32 %s369_s13, 4 }
  0x4b   : > { %p371_p7 = scmp.lt.s32.totalorder %s1214_s26, 47  ;;  %389 = sbr.rel (%p1218_p8) target bundleno = 89 (0x59), region = 86 }
  0x4d   : > { %s1917_s26 = smov (!%p371_p7, %s1214_s26), 47 }
  0x4e   : > { %s1215_s28 = sshll.u32 %s1917_s26, 2 }
  0x4f   : > { %s1789_s1 = scalar_lea.vmem %s1894_s3, %s1215_s28 }
  0x50   : > { %v1656_v4 = vmov 0.0  }
  0x51   : > { %390 = vst [vmem:[#allocation2 + $0x30] sm:$0xff] %v1656_v4  ;;  %391 = vst [vmem:[#allocation2] sm:$0xff] %v1656_v4 }
  0x52   : > { %392 = vst [vmem:[#allocation2 + $0x58] sm:$0xff] %v1656_v4  ;;  %393 = vst [vmem:[#allocation2 + $0x18] sm:$0xff] %v1656_v4 }
  0x53   : > { %394 = vst [vmem:[#allocation2 + $0x50] sm:$0xff] %v1656_v4  ;;  %395 = vst [vmem:[#allocation2 + $0x68] sm:$0xff] %v1656_v4 }
  0x54   : > { %396 = vst [vmem:[#allocation2 + $0x8] sm:$0xff] %v1656_v4  ;;  %397 = vst [vmem:[#allocation2 + $0x48] sm:$0xff] %v1656_v4 }
  0x55   : > { %398 = vst [vmem:[#allocation2 + $0x40] sm:$0xff] %v1656_v4  ;;  %399 = vst [vmem:[#allocation2 + $0x20] sm:$0xff] %v1656_v4 }
  0x56   : > { %400 = vst [vmem:[#allocation2 + $0x10] sm:$0xff] %v1656_v4  ;;  %401 = vst [vmem:[#allocation2 + $0x38] sm:$0xff] %v1656_v4 }
  0x57   : > { %402 = vst [vmem:[#allocation2 + $0x60] sm:$0xff] %v1656_v4  ;;  %403 = vst [vmem:[#allocation2 + $0x70] sm:$0xff] %v1656_v4 }
  0x58   : > { %404 = vst [vmem:[#allocation2 + $0x78] sm:$0xff] %v1656_v4  ;;  %405 = vst [vmem:[#allocation2 + $0x28] sm:$0xff] %v1656_v4 }
  0x59 PF: > { %s406_s24 = sld [smem:[#allocation5 + %s1640_s16]] }
  0x5f   : > { %p1219_p9 = scmp.ge.s32.totalorder %s1636_s15, %s406_s24 }
  0x61   : > { %410 = sbr.rel (%p1219_p9) target bundleno = 345 (0x159), region = 90 }
  0x66   : > { %v1548_v5 = vld [vmem:[%s1789_s1 + $0x38] sm:$0xff]   ;;  %v1549_v6 = vld [vmem:[%s1789_s1 + $0x30] sm:$0xff]   ;;  %v1550_v7 = vld [vmem:[%s1789_s1 + $0x28] sm:$0xff]  }
  0x67   : > { %1376 = vmatprep.subr.bf16.mxu0 %v1548_v5  ;;  %1472 = vmatprep.subr.bf16.mxu1 %v1548_v5  ;;  %v1551_v8 = vld [vmem:[%s1789_s1 + $0x20] sm:$0xff]   ;;  %v429_v10 = vld [vmem:[%s1791_s23 + $0x10] sm:$0xff]  ;;  %v1552_v13 = vld [vmem:[%s1789_s1 + $0x18] sm:$0xff]  }
  0x68   : > { %1377 = vmatpush3.bf16.msra.mxu0 %v1548_v5  ;;  %1480 = vmatpush3.bf16.msra.mxu1 %v1548_v5  ;;  %v427_v9 = vld [vmem:[%s1791_s23] sm:$0xff]  ;;  %v435_v12 = vunpack.c.l.s8.bf16 %v429_v10  ;;  %v1553_v14 = vld [vmem:[%s1789_s1 + $0x10] sm:$0xff]   ;;  %v1554_v15 = vld [vmem:[%s1789_s1 + $0x8] sm:$0xff]   ;;  %v436_v20 = vunpack.c.h.s8.bf16 %v429_v10 }
  0x69   : > { %1378 = vmatprep.subr.bf16.mxu0 %v1549_v6  ;;  %1473 = vmatprep.subr.bf16.mxu1 %v1549_v6  ;;  %v431_v11 = vunpack.c.l.s8.bf16 %v427_v9  ;;  %v1555_v16 = vld [vmem:[%s1789_s1] sm:$0xff]   ;;  %v428_v17 = vld [vmem:[%s1791_s23 + $0x8] sm:$0xff]  ;;  %v430_v18 = vld [vmem:[%s1791_s23 + $0x18] sm:$0xff]  ;;  %v432_v19 = vunpack.c.h.s8.bf16 %v427_v9 }
  0x6a   : > { %1400 = vmatprep.mubr.bf16.mxu1 %v435_v12  ;;  %v433_v21 = vunpack.c.l.s8.bf16 %v428_v17  ;;  %v437_v22 = vunpack.c.l.s8.bf16 %v430_v18  ;;  %v434_v23 = vunpack.c.h.s8.bf16 %v428_v17  ;;  %v438_v24 = vunpack.c.h.s8.bf16 %v430_v18  ;;  %v413_v25 = vld [vmem:[#allocation2 + $0x58] sm:$0xff]  ;;  %v421_v26 = vld [vmem:[#allocation2 + $0x10] sm:$0xff]  ;;  %v419_v30 = vld [vmem:[#allocation2 + $0x40] sm:$0xff] }
  0x6b   : > { %1392 = vmatprep.mubr.bf16.mxu0 %v431_v11  ;;  %v411_v29 = vld [vmem:[#allocation2 + $0x30] sm:$0xff]  ;;  %v414_v35 = vld [vmem:[#allocation2 + $0x18] sm:$0xff]  ;;  %v412_v41 = vld [vmem:[#allocation2] sm:$0xff] }
  0x6c   : > { %1379 = vmatpush3.bf16.msra.mxu0 %v1549_v6  ;;  %1481 = vmatpush3.bf16.msra.mxu1 %v1549_v6  ;;  %v422_v36 = vld [vmem:[#allocation2 + $0x38] sm:$0xff]  ;;  %v420_v42 = vld [vmem:[#allocation2 + $0x20] sm:$0xff]  ;;  %v417_v47 = vld [vmem:[#allocation2 + $0x8] sm:$0xff] }
  0x6d   : > { %1380 = vmatprep.subr.bf16.mxu0 %v1550_v7  ;;  %1474 = vmatprep.subr.bf16.mxu1 %v1550_v7  ;;  %v425_v48 = vld [vmem:[#allocation2 + $0x78] sm:$0xff]  ;;  %v415_v53 = vld [vmem:[#allocation2 + $0x50] sm:$0xff]  ;;  %v423_v54 = vld [vmem:[#allocation2 + $0x60] sm:$0xff] }
  0x6e   : > { %v418_v59 = vld [vmem:[#allocation2 + $0x48] sm:$0xff]  ;;  %v424_v2 = vld [vmem:[#allocation2 + $0x70] sm:$0xff] }
  0x6f   : > { %v426_v60 = vld [vmem:[#allocation2 + $0x28] sm:$0xff] }
  0x70   : > { %1381 = vmatpush3.bf16.msra.mxu0 %v1550_v7  ;;  %1482 = vmatpush3.bf16.msra.mxu1 %v1550_v7  ;;  %v416_v1 = vld [vmem:[#allocation2 + $0x68] sm:$0xff] }
  0x71   : > { %1382 = vmatprep.subr.bf16.mxu0 %v1551_v8  ;;  %1475 = vmatprep.subr.bf16.mxu1 %v1551_v8 }
  0x74   : > { %1383 = vmatpush3.bf16.msra.mxu0 %v1551_v8  ;;  %1483 = vmatpush3.bf16.msra.mxu1 %v1551_v8 }
  0x75   : > { %1384 = vmatprep.subr.bf16.mxu0 %v1552_v13  ;;  %1476 = vmatprep.subr.bf16.mxu1 %v1552_v13 }
  0x78   : > { %1385 = vmatpush3.bf16.msra.mxu0 %v1552_v13  ;;  %1484 = vmatpush3.bf16.msra.mxu1 %v1552_v13 }
  0x79   : > { %1386 = vmatprep.subr.bf16.mxu0 %v1553_v14  ;;  %1477 = vmatprep.subr.bf16.mxu1 %v1553_v14 }
  0x7c   : > { %1387 = vmatpush3.bf16.msra.mxu0 %v1553_v14  ;;  %1485 = vmatpush3.bf16.msra.mxu1 %v1553_v14 }
  0x7d   : > { %1388 = vmatprep.subr.bf16.mxu0 %v1554_v15  ;;  %1478 = vmatprep.subr.bf16.mxu1 %v1554_v15 }
  0x80   : > { %1389 = vmatpush3.bf16.msra.mxu0 %v1554_v15  ;;  %1486 = vmatpush3.bf16.msra.mxu1 %v1554_v15 }
  0x81   : > { %1390 = vmatprep.subr.bf16.mxu0 %v1555_v16  ;;  %1479 = vmatprep.subr.bf16.mxu1 %v1555_v16 }
  0x84   : > { %1391 = vmatpush3.bf16.msra.mxu0 %v1555_v16  ;;  %1487 = vmatpush3.bf16.msra.mxu1 %v1555_v16 }
  0x87   : > { %1393 = vmatmul.mubr.bf16.vlgmr.msra.gmra.mxu0 %v432_v19  ;;  %1401 = vmatmul.mubr.bf16.vlgmr.msra.gmra.mxu1 %v436_v20 }
  0x88   : > { %1396 = vmatprep.mubr.bf16.mxu0 %v433_v21  ;;  %1404 = vmatprep.mubr.bf16.mxu1 %v437_v22 }
  0x8f   : > { %1397 = vmatmul.mubr.bf16.gmra.mxu0 %v434_v23  ;;  %1405 = vmatmul.mubr.bf16.gmra.mxu1 %v438_v24 }
 0x147   : > { %v1394_v27 = vpop.f32.mrf.mxu0  ;;  %v1402_v28 = vpop.f32.mrf.mxu1 }
 0x148   : > { %v602_v31 = vadd.f32 %v1394_v27, %v413_v25  ;;  %v610_v32 = vadd.f32 %v1402_v28, %v421_v26 }
 0x149   : > { %v537_v33 = vpop.f32.mrf.mxu0  ;;  %v569_v34 = vpop.f32.mrf.mxu1 }
 0x14a   : > { %618 = vst [vmem:[#allocation2 + $0x58] sm:$0xff] %v602_v31  ;;  %626 = vst [vmem:[#allocation2 + $0x10] sm:$0xff] %v610_v32  ;;  %v600_v37 = vadd.f32 %v537_v33, %v411_v29  ;;  %v608_v38 = vadd.f32 %v569_v34, %v419_v30 }
 0x14b   : > { %v1395_v39 = vpop.f32.mrf.mxu0  ;;  %v1403_v40 = vpop.f32.mrf.mxu1 }
 0x14c   : > { %616 = vst [vmem:[#allocation2 + $0x30] sm:$0xff] %v600_v37  ;;  %624 = vst [vmem:[#allocation2 + $0x40] sm:$0xff] %v608_v38  ;;  %v603_v43 = vadd.f32 %v1395_v39, %v414_v35  ;;  %v611_v44 = vadd.f32 %v1403_v40, %v422_v36 }
 0x14d   : > { %v540_v45 = vpop.f32.mrf.mxu0  ;;  %v572_v46 = vpop.f32.mrf.mxu1 }
 0x14e   : > { %619 = vst [vmem:[#allocation2 + $0x18] sm:$0xff] %v603_v43  ;;  %627 = vst [vmem:[#allocation2 + $0x38] sm:$0xff] %v611_v44  ;;  %v601_v49 = vadd.f32 %v540_v45, %v412_v41  ;;  %v609_v50 = vadd.f32 %v572_v46, %v420_v42 }
 0x14f   : > { %v1398_v51 = vpop.f32.mrf.mxu0  ;;  %v1406_v52 = vpop.f32.mrf.mxu1 }
 0x150   : > { %617 = vst [vmem:[#allocation2] sm:$0xff] %v601_v49  ;;  %625 = vst [vmem:[#allocation2 + $0x20] sm:$0xff] %v609_v50  ;;  %v606_v55 = vadd.f32 %v1398_v51, %v417_v47  ;;  %v614_v56 = vadd.f32 %v1406_v52, %v425_v48 }
 0x151   : > { %v553_v57 = vpop.f32.mrf.mxu0  ;;  %v585_v58 = vpop.f32.mrf.mxu1 }
 0x152   : > { %622 = vst [vmem:[#allocation2 + $0x8] sm:$0xff] %v606_v55  ;;  %630 = vst [vmem:[#allocation2 + $0x78] sm:$0xff] %v614_v56  ;;  %v604_v61 = vadd.f32 %v553_v57, %v415_v53  ;;  %v612_v62 = vadd.f32 %v585_v58, %v423_v54 }
 0x153   : > { %v1399_v63 = vpop.f32.mrf.mxu0  ;;  %v1407_v0 = vpop.f32.mrf.mxu1 }
 0x154   : > { %620 = vst [vmem:[#allocation2 + $0x50] sm:$0xff] %v604_v61  ;;  %628 = vst [vmem:[#allocation2 + $0x60] sm:$0xff] %v612_v62  ;;  %v607_v3 = vadd.f32 %v1399_v63, %v418_v59  ;;  %v615_v4 = vadd.f32 %v1407_v0, %v426_v60 }
 0x155   : > { %v556_v5 = vpop.f32.mrf.mxu0  ;;  %v588_v6 = vpop.f32.mrf.mxu1 }
 0x156   : > { %623 = vst [vmem:[#allocation2 + $0x48] sm:$0xff] %v607_v3  ;;  %631 = vst [vmem:[#allocation2 + $0x28] sm:$0xff] %v615_v4  ;;  %v605_v7 = vadd.f32 %v556_v5, %v416_v1  ;;  %v613_v8 = vadd.f32 %v588_v6, %v424_v2 }
 0x158   : > { %621 = vst [vmem:[#allocation2 + $0x68] sm:$0xff] %v605_v7  ;;  %629 = vst [vmem:[#allocation2 + $0x70] sm:$0xff] %v613_v8 }
 0x159 PF: > { %p1228_p10 = scmp.ne.s32.totalorder %s1636_s15, 2 }
 0x15b   : > { %635 = sbr.rel (%p1228_p10) target bundleno = 821 (0x335), region = 94 }
 0x160   : > { %v1556_v9 = vld [vmem:[%s1895_s4 + $0x38] sm:$0xff]   ;;  %v1557_v10 = vld [vmem:[%s1895_s4 + $0x30] sm:$0xff]   ;;  %v1558_v11 = vld [vmem:[%s1895_s4 + $0x28] sm:$0xff]  }
 0x161   : > { %1408 = vmatprep.subr.bf16.mxu0 %v1556_v9  ;;  %v1559_v12 = vld [vmem:[%s1895_s4 + $0x20] sm:$0xff]   ;;  %v636_v13 = vld [vmem:[#allocation2 + $0x30] sm:$0xff]  ;;  %v1560_v16 = vld [vmem:[%s1895_s4 + $0x18] sm:$0xff]  }
 0x162   : > { %1409 = vmatpush3.bf16.msra.mxu0 %v1556_v9  ;;  %v637_v14 = vld [vmem:[#allocation2] sm:$0xff]  ;;  %v1564_v17 = vld [vmem:[%s1897_s6 + $0x38] sm:$0xff]   ;;  %v1565_v18 = vld [vmem:[%s1897_s6 + $0x30] sm:$0xff]  }
 0x163   : > { %1410 = vmatprep.subr.bf16.mxu0 %v1557_v10  ;;  %v652_v15 = vpack.c.bf16 %v637_v14, %v636_v13  ;;  %v1561_v19 = vld [vmem:[%s1895_s4 + $0x10] sm:$0xff]   ;;  %1440 = vmatprep.subr.bf16.mxu1 %v1564_v17  ;;  %v1566_v20 = vld [vmem:[%s1897_s6 + $0x28] sm:$0xff]   ;;  %v1567_v22 = vld [vmem:[%s1897_s6 + $0x20] sm:$0xff]  }
 0x164   : > { %1441 = vmatpush3.bf16.msra.mxu1 %v1564_v17  ;;  %v1562_v21 = vld [vmem:[%s1895_s4 + $0x8] sm:$0xff]   ;;  %v1563_v23 = vld [vmem:[%s1895_s4] sm:$0xff]   ;;  %v1568_v24 = vld [vmem:[%s1897_s6 + $0x18] sm:$0xff]  }
 0x165   : > { %1424 = vmatprep.mubr.bf16.mxu0 %v652_v15  ;;  %1442 = vmatprep.subr.bf16.mxu1 %v1565_v18  ;;  %v638_v25 = vld [vmem:[#allocation2 + $0x58] sm:$0xff]  ;;  %v640_v27 = vld [vmem:[#allocation2 + $0x50] sm:$0xff]  ;;  %v641_v28 = vld [vmem:[#allocation2 + $0x68] sm:$0xff] }
 0x166   : > { %1411 = vmatpush3.bf16.msra.mxu0 %v1557_v10  ;;  %v639_v26 = vld [vmem:[#allocation2 + $0x18] sm:$0xff]  ;;  %v654_v30 = vpack.c.bf16 %v641_v28, %v640_v27  ;;  %v642_v31 = vld [vmem:[#allocation2 + $0x8] sm:$0xff]  ;;  %v644_v33 = vld [vmem:[#allocation2 + $0x40] sm:$0xff] }
 0x167   : > { %1412 = vmatprep.subr.bf16.mxu0 %v1558_v11  ;;  %v653_v29 = vpack.c.bf16 %v639_v26, %v638_v25  ;;  %v643_v32 = vld [vmem:[#allocation2 + $0x48] sm:$0xff]  ;;  %v645_v34 = vld [vmem:[#allocation2 + $0x20] sm:$0xff]  ;;  %v646_v37 = vld [vmem:[#allocation2 + $0x10] sm:$0xff] }
 0x168   : > { %1443 = vmatpush3.bf16.msra.mxu1 %v1565_v18  ;;  %v655_v35 = vpack.c.bf16 %v643_v32, %v642_v31  ;;  %v656_v36 = vpack.c.bf16 %v645_v34, %v644_v33  ;;  %v647_v38 = vld [vmem:[#allocation2 + $0x38] sm:$0xff]  ;;  %v648_v39 = vld [vmem:[#allocation2 + $0x60] sm:$0xff]  ;;  %v649_v40 = vld [vmem:[#allocation2 + $0x70] sm:$0xff] }
 0x169   : > { %1444 = vmatprep.subr.bf16.mxu1 %v1566_v20  ;;  %v657_v41 = vpack.c.bf16 %v647_v38, %v646_v37  ;;  %v658_v42 = vpack.c.bf16 %v649_v40, %v648_v39  ;;  %v650_v43 = vld [vmem:[#allocation2 + $0x78] sm:$0xff]  ;;  %v651_v44 = vld [vmem:[#allocation2 + $0x28] sm:$0xff]  ;;  %v1569_v46 = vld [vmem:[%s1897_s6 + $0x10] sm:$0xff]  }
 0x16a   : > { %1413 = vmatpush3.bf16.msra.mxu0 %v1558_v11  ;;  %v659_v45 = vpack.c.bf16 %v651_v44, %v650_v43  ;;  %v1570_v47 = vld [vmem:[%s1897_s6 + $0x8] sm:$0xff]   ;;  %v1571_v48 = vld [vmem:[%s1897_s6] sm:$0xff]  }
 0x16b   : > { %1414 = vmatprep.subr.bf16.mxu0 %v1559_v12  ;;  %v1229_v51 = vld [vmem:[%s1896_s5] ss:$0 sm:$0xff] }
 0x16c   : > { %1445 = vmatpush3.bf16.msra.mxu1 %v1566_v20  ;;  %v1238_v43 = vld [vmem:[%s1898_s7] ss:$0 sm:$0xff] }
 0x16d   : > { %1446 = vmatprep.subr.bf16.mxu1 %v1567_v22 }
 0x16e   : > { %1415 = vmatpush3.bf16.msra.mxu0 %v1559_v12 }
 0x16f   : > { %1416 = vmatprep.subr.bf16.mxu0 %v1560_v16 }
 0x170   : > { %1447 = vmatpush3.bf16.msra.mxu1 %v1567_v22 }
 0x171   : > { %1448 = vmatprep.subr.bf16.mxu1 %v1568_v24 }
 0x172   : > { %1417 = vmatpush3.bf16.msra.mxu0 %v1560_v16 }
 0x173   : > { %1418 = vmatprep.subr.bf16.mxu0 %v1561_v19 }
 0x174   : > { %1449 = vmatpush3.bf16.msra.mxu1 %v1568_v24 }
 0x175   : > { %1450 = vmatprep.subr.bf16.mxu1 %v1569_v46 }
 0x176   : > { %1419 = vmatpush3.bf16.msra.mxu0 %v1561_v19 }
 0x177   : > { %1420 = vmatprep.subr.bf16.mxu0 %v1562_v21 }
 0x178   : > { %1451 = vmatpush3.bf16.msra.mxu1 %v1569_v46 }
 0x179   : > { %1452 = vmatprep.subr.bf16.mxu1 %v1570_v47 }
 0x17a   : > { %1421 = vmatpush3.bf16.msra.mxu0 %v1562_v21 }
 0x17b   : > { %1422 = vmatprep.subr.bf16.mxu0 %v1563_v23 }
 0x17c   : > { %1453 = vmatpush3.bf16.msra.mxu1 %v1570_v47 }
 0x17d   : > { %1454 = vmatprep.subr.bf16.mxu1 %v1571_v48 }
 0x17e   : > { %1423 = vmatpush3.bf16.msra.mxu0 %v1563_v23 }
 0x180   : > { %1455 = vmatpush3.bf16.msra.mxu1 %v1571_v48 }
 0x181   : > { %1425 = vmatmul.mubr.bf16.vlgmr.msra.gmra.mxu0 %v653_v29 }
 0x182   : > { %1428 = vmatprep.mubr.bf16.mxu0 %v654_v30 }
 0x189   : > { %1429 = vmatmul.mubr.bf16.gmra.mxu0 %v655_v35 }
 0x18a   : > { %1432 = vmatprep.mubr.bf16.mxu0 %v656_v36 }
 0x191   : > { %1433 = vmatmul.mubr.bf16.gmra.mxu0 %v657_v41 }
 0x192   : > { %1436 = vmatprep.mubr.bf16.mxu0 %v658_v42 }
 0x199   : > { %1437 = vmatmul.mubr.bf16.gmra.mxu0 %v659_v45 }
 0x241   : > { %v1426_v49 = vpop.f32.mrf.mxu0 }
 0x242   : > { %v774_v55 = vadd.f32 %v1426_v49, %v1229_v51 }
 0x243   : > { %v765_v50 = vpop.f32.mrf.mxu0 }
 0x244   : > { %v766_v53 = vadd.f32 %v1229_v51, %v765_v50  ;;  %v830_v62 = vmax.f32 %v774_v55, 0.0 }
 0x245   : > { %v1427_v52 = vpop.f32.mrf.mxu0 }
 0x246   : > { %v777_v54 = vadd.f32 %v1427_v52, %v1229_v51  ;;  %v828_v60 = vmax.f32 %v766_v53, 0.0 }
 0x247   : > { %v768_v56 = vpop.f32.mrf.mxu0 }
 0x248   : > { %v769_v57 = vadd.f32 %v1229_v51, %v768_v56  ;;  %v831_v58 = vmax.f32 %v777_v54, 0.0 }
 0x249   : > { %v1430_v59 = vpop.f32.mrf.mxu0 }
 0x24a   : > { %v829_v61 = vmax.f32 %v769_v57, 0.0  ;;  %v845_v1 = vpack.c.bf16 %v831_v58, %v830_v62  ;;  %v790_v5 = vadd.f32 %v1430_v59, %v1229_v51 }
 0x24b   : > { %v781_v63 = vpop.f32.mrf.mxu0 }
 0x24c   : > { %v844_v0 = vpack.c.bf16 %v829_v61, %v828_v60  ;;  %v782_v3 = vadd.f32 %v1229_v51, %v781_v63  ;;  %v834_v12 = vmax.f32 %v790_v5, 0.0 }
 0x24d   : > { %v1431_v2 = vpop.f32.mrf.mxu0 }
 0x24e   : > { %v793_v4 = vadd.f32 %v1431_v2, %v1229_v51  ;;  %1456 = vmatprep.mubr.bf16.mxu1 %v844_v0  ;;  %v832_v10 = vmax.f32 %v782_v3, 0.0 }
 0x24f   : > { %v784_v6 = vpop.f32.mrf.mxu0  ;;  %1457 = vmatmul.mubr.bf16.vlgmr.msra.gmra.mxu1 %v845_v1 }
 0x250   : > { %v785_v7 = vadd.f32 %v1229_v51, %v784_v6  ;;  %v835_v8 = vmax.f32 %v793_v4, 0.0 }
 0x251   : > { %v1434_v9 = vpop.f32.mrf.mxu0 }
 0x252   : > { %v833_v11 = vmax.f32 %v785_v7, 0.0  ;;  %v847_v15 = vpack.c.bf16 %v835_v8, %v834_v12  ;;  %v806_v19 = vadd.f32 %v1434_v9, %v1229_v51 }
 0x253   : > { %v797_v13 = vpop.f32.mrf.mxu0 }
 0x254   : > { %v846_v14 = vpack.c.bf16 %v833_v11, %v832_v10  ;;  %v798_v17 = vadd.f32 %v1229_v51, %v797_v13  ;;  %v838_v26 = vmax.f32 %v806_v19, 0.0 }
 0x255   : > { %v1435_v16 = vpop.f32.mrf.mxu0 }
 0x256   : > { %v809_v18 = vadd.f32 %v1435_v16, %v1229_v51  ;;  %1460 = vmatprep.mubr.bf16.mxu1 %v846_v14  ;;  %v836_v24 = vmax.f32 %v798_v17, 0.0 }
 0x257   : > { %v800_v20 = vpop.f32.mrf.mxu0  ;;  %1461 = vmatmul.mubr.bf16.gmra.mxu1 %v847_v15 }
 0x258   : > { %v801_v21 = vadd.f32 %v1229_v51, %v800_v20  ;;  %v839_v22 = vmax.f32 %v809_v18, 0.0 }
 0x259   : > { %v1438_v23 = vpop.f32.mrf.mxu0 }
 0x25a   : > { %v837_v25 = vmax.f32 %v801_v21, 0.0  ;;  %v849_v29 = vpack.c.bf16 %v839_v22, %v838_v26  ;;  %v822_v33 = vadd.f32 %v1438_v23, %v1229_v51 }
 0x25b   : > { %v813_v27 = vpop.f32.mrf.mxu0 }
 0x25c   : > { %v848_v28 = vpack.c.bf16 %v837_v25, %v836_v24  ;;  %v814_v31 = vadd.f32 %v1229_v51, %v813_v27  ;;  %v842_v39 = vmax.f32 %v822_v33, 0.0 }
 0x25d   : > { %v1439_v30 = vpop.f32.mrf.mxu0 }
 0x25e   : > { %v825_v32 = vadd.f32 %v1439_v30, %v1229_v51  ;;  %1464 = vmatprep.mubr.bf16.mxu1 %v848_v28  ;;  %v840_v37 = vmax.f32 %v814_v31, 0.0 }
 0x25f   : > { %v816_v34 = vpop.f32.mrf.mxu0  ;;  %1465 = vmatmul.mubr.bf16.gmra.mxu1 %v849_v29 }
 0x260   : > { %v817_v35 = vadd.f32 %v1229_v51, %v816_v34  ;;  %v843_v36 = vmax.f32 %v825_v32, 0.0 }
 0x262   : > { %v841_v38 = vmax.f32 %v817_v35, 0.0  ;;  %v851_v41 = vpack.c.bf16 %v843_v36, %v842_v39 }
 0x264   : > { %v850_v40 = vpack.c.bf16 %v841_v38, %v840_v37 }
 0x266   : > { %1468 = vmatprep.mubr.bf16.mxu1 %v850_v40 }
 0x267   : > { %1469 = vmatmul.mubr.bf16.gmra.mxu1 %v851_v41 }
 0x30f   : > { %v1458_v42 = vpop.f32.mrf.mxu1 }
 0x310   : > { %v966_v45 = vadd.f32 %v1458_v42, %v1238_v43 }
 0x311   : > { %v957_v44 = vpop.f32.mrf.mxu1 }
 0x312   : > { %v958_v47 = vadd.f32 %v1238_v43, %v957_v44  ;;  %v1022_v50 = vmax.f32 %v966_v45, 0.0 }
 0x313   : > { %v1459_v46 = vpop.f32.mrf.mxu1 }
 0x314   : > { %v969_v48 = vadd.f32 %v1459_v46, %v1238_v43  ;;  %v1020_v54 = vmax.f32 %v958_v47, 0.0 }
 0x315   : > { %v960_v49 = vpop.f32.mrf.mxu1 }
 0x316   : > { %v1023_v51 = vmax.f32 %v969_v48, 0.0  ;;  %v961_v52 = vadd.f32 %v1238_v43, %v960_v49 }
 0x317   : > { %v1462_v53 = vpop.f32.mrf.mxu1 }
 0x318   : > { %v1289_v55 = vpack.c.bf16 %v1023_v51, %v1022_v50  ;;  %v1021_v56 = vmax.f32 %v961_v52, 0.0  ;;  %v982_v59 = vadd.f32 %v1462_v53, %v1238_v43 }
 0x319   : > { %v973_v57 = vpop.f32.mrf.mxu1 }
 0x31a   : > { %1321 = vst [vmem:[%s1784_s27 + $0x8] sm:$0xff] %v1289_v55   ;;  %v1284_v58 = vpack.c.bf16 %v1021_v56, %v1020_v54  ;;  %v974_v61 = vadd.f32 %v1238_v43, %v973_v57  ;;  %v1026_v0 = vmax.f32 %v982_v59, 0.0 }
 0x31b   : > { %v1463_v60 = vpop.f32.mrf.mxu1 }
 0x31c   : > { %1285 = vst [vmem:[%s1784_s27] sm:$0xff] %v1284_v58   ;;  %v985_v62 = vadd.f32 %v1463_v60, %v1238_v43  ;;  %v1024_v4 = vmax.f32 %v974_v61, 0.0 }
 0x31d   : > { %v976_v63 = vpop.f32.mrf.mxu1 }
 0x31e   : > { %v1027_v1 = vmax.f32 %v985_v62, 0.0  ;;  %v977_v2 = vadd.f32 %v1238_v43, %v976_v63 }
 0x31f   : > { %v1466_v3 = vpop.f32.mrf.mxu1 }
 0x320   : > { %v1299_v5 = vpack.c.bf16 %v1027_v1, %v1026_v0  ;;  %v1025_v6 = vmax.f32 %v977_v2, 0.0  ;;  %v998_v9 = vadd.f32 %v1466_v3, %v1238_v43 }
 0x321   : > { %v989_v7 = vpop.f32.mrf.mxu1 }
 0x322   : > { %1323 = vst [vmem:[%s1784_s27 + $0x18] sm:$0xff] %v1299_v5   ;;  %v1294_v8 = vpack.c.bf16 %v1025_v6, %v1024_v4  ;;  %v990_v11 = vadd.f32 %v1238_v43, %v989_v7  ;;  %v1030_v14 = vmax.f32 %v998_v9, 0.0 }
 0x323   : > { %v1467_v10 = vpop.f32.mrf.mxu1 }
 0x324   : > { %1322 = vst [vmem:[%s1784_s27 + $0x10] sm:$0xff] %v1294_v8   ;;  %v1001_v12 = vadd.f32 %v1467_v10, %v1238_v43  ;;  %v1028_v18 = vmax.f32 %v990_v11, 0.0 }
 0x325   : > { %v992_v13 = vpop.f32.mrf.mxu1 }
 0x326   : > { %v1031_v15 = vmax.f32 %v1001_v12, 0.0  ;;  %v993_v16 = vadd.f32 %v1238_v43, %v992_v13 }
 0x327   : > { %v1470_v17 = vpop.f32.mrf.mxu1 }
 0x328   : > { %v1309_v19 = vpack.c.bf16 %v1031_v15, %v1030_v14  ;;  %v1029_v20 = vmax.f32 %v993_v16, 0.0  ;;  %v1014_v23 = vadd.f32 %v1470_v17, %v1238_v43 }
 0x329   : > { %v1005_v21 = vpop.f32.mrf.mxu1 }
 0x32a   : > { %1325 = vst [vmem:[%s1784_s27 + $0x28] sm:$0xff] %v1309_v19   ;;  %v1304_v22 = vpack.c.bf16 %v1029_v20, %v1028_v18  ;;  %v1006_v25 = vadd.f32 %v1238_v43, %v1005_v21  ;;  %v1034_v28 = vmax.f32 %v1014_v23, 0.0 }
 0x32b   : > { %v1471_v24 = vpop.f32.mrf.mxu1 }
 0x32c   : > { %1324 = vst [vmem:[%s1784_s27 + $0x20] sm:$0xff] %v1304_v22   ;;  %v1017_v26 = vadd.f32 %v1471_v24, %v1238_v43  ;;  %v1032_v31 = vmax.f32 %v1006_v25, 0.0 }
 0x32d   : > { %v1008_v27 = vpop.f32.mrf.mxu1 }
 0x32e   : > { %v1035_v29 = vmax.f32 %v1017_v26, 0.0  ;;  %v1009_v30 = vadd.f32 %v1238_v43, %v1008_v27 }
 0x330   : > { %v1319_v32 = vpack.c.bf16 %v1035_v29, %v1034_v28  ;;  %v1033_v33 = vmax.f32 %v1009_v30, 0.0 }
 0x332   : > { %1327 = vst [vmem:[%s1784_s27 + $0x38] sm:$0xff] %v1319_v32   ;;  %v1314_v34 = vpack.c.bf16 %v1033_v33, %v1032_v31 }
 0x334   : > { %1326 = vst [vmem:[%s1784_s27 + $0x30] sm:$0xff] %v1314_v34  }
 0x335 PF: > { %s28_s19 = sadd.s32 1, %s1652_s19   ;;  %s1902_s1 = smov %s1632_s14 }
 0x336   : > { %p25_p11 = scmp.ge.s32.totalorder %s28_s19, 11   ;;  %s1903_s14 = smov %s1765_s11 }
 0x337   : > { %s1904_s15 = smov %s1644_s17  ;;  %s1905_s16 = smov %s1648_s18 }
 0x338   : > { %s1906_s17 = smov %s1909_s20  ;;  %s1907_s18 = smov %s1913_s21 }
 0x339   :  { %27 = sbr.rel (!%p25_p11) target bundleno = 29 (0x1d), region = 132 }

</bundles_post_ra>
